<compile_context>
chip_gen: v7x
topology: tpu7x:2x2x1
jax: 0.10.0
libtpu: 0.0.40
codegen_flags: <defaults>
</compile_context>

<pallas_src>
import functools

import jax
import jax.numpy as jnp
from jax.experimental import pallas as pl
from jax.experimental.pallas import tpu as pltpu


# Padded layer widths (lane-aligned): 400 -> 512, 200 -> 256, 100 -> 128.
_H1, _H2, _H3 = 512, 256, 128
_NH = 8            # head-slab height (sublanes): row 0 = critic/disc, row 1 = disc in 'both'


def _round_up(x, m):
    return int(pl.cdiv(int(x), m) * m)


# ----------------------------------------------------------------------------
# Kernels
# ----------------------------------------------------------------------------
def _trunk(x, w1_ref, b1_ref, w2_ref, b2_ref, w3_ref, b3_ref):
    """feat_net on one (TM, Fp) tile.  Returns f32 (TM, 128); cols >= 100 are zero."""
    cdt = w1_ref.dtype                       # compute dtype (f32 or bf16); accum stays f32
    h = jnp.dot(x.astype(cdt), w1_ref[...],
                preferred_element_type=jnp.float32) + b1_ref[...]
    h = jnp.maximum(h, 0.0)
    h = jnp.dot(h.astype(cdt), w2_ref[...],
                preferred_element_type=jnp.float32) + b2_ref[...]
    h = jnp.maximum(h, 0.0)
    h = jnp.dot(h.astype(cdt), w3_ref[...],
                preferred_element_type=jnp.float32) + b3_ref[...]
    h = jnp.maximum(h, 0.0)
    return h


def _feat_kernel(x_ref, w1_ref, b1_ref, w2_ref, b2_ref, w3_ref, b3_ref, out_ref):
    """Trunk only (require == 'feat').  No head weights are DMA'd."""
    h = _trunk(x_ref[...], w1_ref, b1_ref, w2_ref, b2_ref, w3_ref, b3_ref)
    out_ref[...] = h.astype(out_ref.dtype)


def _head_kernel(x_ref, w1_ref, b1_ref, w2_ref, b2_ref, w3_ref, b3_ref,
                 wot_ref, bot_ref, out_ref, *, activation):
    """Trunk + packed transposed head.

    wot_ref: (_NH, 128) -- heads on sublanes, trunk features on lanes.
    out_ref: (_NH, TM)  -- heads on sublanes, batch on lanes (lane-dense stores,
                           ~16x less HBM writeback than a (TM, 128) f32 slab).
    """
    h = _trunk(x_ref[...], w1_ref, b1_ref, w2_ref, b2_ref, w3_ref, b3_ref)
    # (NH, H3) contracted with (TM, H3) on the feature axis -> (NH, TM).
    y = jax.lax.dot_general(
        wot_ref[...], h.astype(wot_ref.dtype),
        dimension_numbers=(((1,), (1,)), ((), ())),
        preferred_element_type=jnp.float32) + bot_ref[...]
    if activation == "sigmoid":
        y = jax.nn.sigmoid(y)                        # tiny (NH, TM) slab
    elif activation == "sigmoid_row1":
        # row 0 = critic (linear), row 1 = discriminator (sigmoid)
        row = jax.lax.broadcasted_iota(jnp.int32, y.shape, 0)
        y = jnp.where(row == 1, jax.nn.sigmoid(y), y)
    out_ref[...] = y.astype(out_ref.dtype)


# ----------------------------------------------------------------------------
# Parameters (natural nn.Linear shapes) + one-time padded / packed copies
# ----------------------------------------------------------------------------
def init_params(input_size, key=jax.random.PRNGKey(0), dtype=jnp.float32):
    dims = [(input_size, 400), (400, 200), (200, 100)]
    keys = jax.random.split(key, 10)
    params = {}
    for idx, (fan_in, fan_out) in enumerate(dims, start=1):
        bound = 1.0 / jnp.sqrt(fan_in)
        params[f"w{idx}"] = jax.random.uniform(
            keys[2 * idx - 2], (fan_in, fan_out), dtype, -bound, bound)
        params[f"b{idx}"] = jax.random.uniform(
            keys[2 * idx - 1], (1, fan_out), dtype, -bound, bound)

    bound = 1.0 / jnp.sqrt(100)
    params["wc"] = jax.random.uniform(keys[6], (100, 1), dtype, -bound, bound)
    params["bc"] = jax.random.uniform(keys[7], (1, 1), dtype, -bound, bound)
    params["wd"] = jax.random.uniform(keys[8], (100, 1), dtype, -bound, bound)
    params["bd"] = jax.random.uniform(keys[9], (1, 1), dtype, -bound, bound)
    return params


def pad_params(params, input_size):
    """One-time lane-aligned padding / head packing, plus bf16 weight copies."""
    Fp = _round_up(input_size, 128)

    def pad2(a, rows, cols):
        return jnp.pad(a, ((0, rows - a.shape[0]), (0, cols - a.shape[1])))

    p = {
        "w1": pad2(params["w1"], Fp, _H1), "b1": pad2(params["b1"], 1, _H1),
        "w2": pad2(params["w2"], _H1, _H2), "b2": pad2(params["b2"], 1, _H2),
        "w3": pad2(params["w3"], _H2, _H3), "b3": pad2(params["b3"], 1, _H3),
    }

    # Transposed head slabs: heads on sublanes (rows), trunk features on lanes.
    def head_slab(rows):
        w = jnp.zeros((_NH, _H3), params["wc"].dtype)
        b = jnp.zeros((_NH, 1), params["bc"].dtype)
        for r, (wk, bk) in enumerate(rows):
            w = w.at[r, :params[wk].shape[0]].set(params[wk][:, 0])
            b = b.at[r, 0].set(params[bk][0, 0])
        return w, b

    p["wot_critic"], p["bot_critic"] = head_slab([("wc", "bc")])
    p["wot_disc"], p["bot_disc"] = head_slab([("wd", "bd")])
    p["wot_both"], p["bot_both"] = head_slab([("wc", "bc"), ("wd", "bd")])

    # bf16 fast-path copies made ONCE here (not per forward call).
    # Biases and MXU accumulation stay f32.
    for k in ("w1", "w2", "w3", "wot_critic", "wot_disc", "wot_both"):
        p[k + "_bf16"] = p[k].astype(jnp.bfloat16)

    p["input_size"] = int(input_size)
    p["input_size_padded"] = Fp
    return p


# ----------------------------------------------------------------------------
# Wrapper
# ----------------------------------------------------------------------------
def feature_discriminator_forward(X, pparams, require="critic", *,
                                  tm=256, use_bf16=False):
    """Forward pass.  require in {'critic', 'discriminator', 'feat', 'both'}.

    'both' is a fused extension: one trunk pass yields (critic, discriminator).
    """
    if X.ndim == 4:                              # X.view(X.size(0), -1)
        X = X.reshape(X.shape[0], -1)
    B, F = X.shape
    if F != pparams["input_size"]:
        raise ValueError(f"expected input_size={pparams['input_size']}, got {F}")
    Fp = pparams["input_size_padded"]
    out_dtype = X.dtype

    # Feature-dim zero pad is REQUIRED for exactness (padded W1 rows are zero,
    # but garbage * 0 != 0 if the padded X columns were left uninitialized).
    if F < Fp:
        X = jnp.pad(X, ((0, 0), (0, Fp - F)))

    # Batch tiling.  No wrapper-side batch pad: grid uses cdiv and Pallas masks
    # the ragged last tile (row-wise kernel -> garbage rows hit masked lanes only).
    tm_req = max(8, _round_up(tm, 8))
    if B > 256:                                  # keep >= 2 grid steps (dual-TC chips)
        tm_req = min(tm_req, _round_up(pl.cdiv(B, 2), 256))
    if tm_req < B:
        tm_eff = _round_up(tm_req, 128)          # multi-step tiles: MXU/lane friendly
        if tm_eff >= B:
            tm_eff = B
    else:
        tm_eff = B                               # one step covering the whole batch
    grid = (pl.cdiv(B, tm_eff),)

    sfx = "_bf16" if use_bf16 else ""
    w1, w2, w3 = pparams["w1" + sfx], pparams["w2" + sfx], pparams["w3" + sfx]
    b1, b2, b3 = pparams["b1"], pparams["b2"], pparams["b3"]

    # X tiles are pipelined (double-buffered).  Weights/biases use a constant
    # index map and a SINGLE buffer -> half the resident VMEM footprint.
    x_spec = pl.BlockSpec((tm_eff, Fp), lambda i: (i, 0))

    def resident_spec(arr):
        return pl.BlockSpec(arr.shape, lambda i: (0, 0),
                            pipeline_mode=pl.Buffered(1))

    def nbytes(a):
        return int(a.size) * int(jnp.dtype(a.dtype).itemsize)

    out_itemsize = int(jnp.dtype(out_dtype).itemsize)
    trunk_flops = 2 * B * (Fp * _H1 + _H1 * _H2 + _H2 * _H3)
    trunk_bytes = nbytes(X) + sum(nbytes(a) for a in (w1, b1, w2, b2, w3, b3))

    if require == "feat":
        operands = (X, w1, b1, w2, b2, w3, b3)
        kernel = _feat_kernel
        out_spec = pl.BlockSpec((tm_eff, _H3), lambda i: (i, 0))
        out_shape = jax.ShapeDtypeStruct((B, _H3), out_dtype)
        out_block_elems = tm_eff * _H3
        head_flops, trans, extra_bytes = 0, 0, 0
        out_bytes = B * _H3 * out_itemsize
    else:
        if require == "critic":
            wot, bot, activation = pparams["wot_critic" + sfx], pparams["bot_critic"], "none"
        elif require == "discriminator":
            wot, bot, activation = pparams["wot_disc" + sfx], pparams["bot_disc"], "sigmoid"
        elif require == "both":
            wot, bot, activation = pparams["wot_both" + sfx], pparams["bot_both"], "sigmoid_row1"
        else:
            raise ValueError(f"unknown require={require!r}")
        operands = (X, w1, b1, w2, b2, w3, b3, wot, bot)
        kernel = functools.partial(_head_kernel, activation=activation)
        out_spec = pl.BlockSpec((_NH, tm_eff), lambda i: (0, i))
        out_shape = jax.ShapeDtypeStruct((_NH, B), out_dtype)
        out_block_elems = _NH * tm_eff
        head_flops = 2 * B * _H3 * _NH
        trans = _NH * B if activation != "none" else 0
        extra_bytes = nbytes(wot) + nbytes(bot)
        out_bytes = _NH * B * out_itemsize

    cost = pl.CostEstimate(flops=int(trunk_flops + head_flops),
                           transcendentals=int(trans),
                           bytes_accessed=int(trunk_bytes + extra_bytes + out_bytes))

    # Explicit VMEM budget: X double-buffer + single-buffered weights + out
    # double-buffer, with headroom (avoids the 16/32 MiB scoped-default cliffs).
    weight_bytes = sum(nbytes(a) for a in operands[1:])
    x_tile_bytes = 2 * tm_eff * Fp * int(jnp.dtype(X.dtype).itemsize)
    out_tile_bytes = 2 * out_block_elems * out_itemsize
    budget = weight_bytes + x_tile_bytes + out_tile_bytes
    vmem_limit = int(min(max(budget + budget // 4 + (2 << 20), 16 << 20), 64 << 20))

    out = pl.pallas_call(
        kernel,
        grid=grid,
        in_specs=[x_spec] + [resident_spec(a) for a in operands[1:]],
        out_specs=out_spec,
        out_shape=out_shape,
        compiler_params=pltpu.CompilerParams(
            dimension_semantics=("parallel",),
            vmem_limit_bytes=vmem_limit),
        cost_estimate=cost,
    )(*operands)

    if require == "feat":
        return out[:, :100]                      # (B, 100) features
    if require == "both":
        return out[0], out[1]                    # (critic, discriminator), each (B,)
    return out[0]                                # .view(-1)


# ----------------------------------------------------------------------------
# Pure-JAX reference (natural, unpadded parameters)
# ----------------------------------------------------------------------------
def _ref_forward(X, params, require="critic"):
    if X.ndim == 4:
        X = X.reshape(X.shape[0], -1)
    h = jnp.maximum(X @ params["w1"] + params["b1"], 0.0)
    h = jnp.maximum(h @ params["w2"] + params["b2"], 0.0)
    h = jnp.maximum(h @ params["w3"] + params["b3"], 0.0)
    if require == "feat":
        return h
    if require == "critic":
        return (h @ params["wc"] + params["bc"]).reshape(-1)
    return jax.nn.sigmoid(h @ params["wd"] + params["bd"]).reshape(-1)


if __name__ == "__main__":
    key = jax.random.PRNGKey(0)
    kx, kx2, kp = jax.random.split(key, 3)

    # Small 4-D (NCHW) input, as the module would receive from a conv stack.
    B, C, H, W = 2, 4, 16, 16
    x = jax.random.normal(kx, (B, C, H, W), jnp.float32)
    input_size = C * H * W  # 1024

    params = init_params(input_size, key=kp)
    pparams = pad_params(params, input_size)     # one-time padding / packing / bf16 copies

    # The three original modes (f32).
    for req in ("critic", "discriminator", "feat"):
        out = jax.block_until_ready(
            feature_discriminator_forward(x, pparams, require=req))
        ref = _ref_forward(x, params, require=req)
        assert out.shape == ref.shape, (req, out.shape, ref.shape)
        assert jnp.allclose(out, ref, atol=1e-4, rtol=1e-4), req

    # Fused both-heads mode (single trunk pass).
    c_out, d_out = feature_discriminator_forward(x, pparams, require="both")
    jax.block_until_ready((c_out, d_out))
    assert jnp.allclose(c_out, _ref_forward(x, params, "critic"), atol=1e-4, rtol=1e-4)
    assert jnp.allclose(d_out, _ref_forward(x, params, "discriminator"), atol=1e-4, rtol=1e-4)

    # Multi-tile grid with a ragged last tile (300 = 256 + 44), 2-D input.
    B2 = 300
    x2 = jax.random.normal(kx2, (B2, input_size), jnp.float32)
    out2 = jax.block_until_ready(
        feature_discriminator_forward(x2, pparams, require="critic", tm=256))
    ref2 = _ref_forward(x2, params, require="critic")
    assert out2.shape == ref2.shape
    assert jnp.allclose(out2, ref2, atol=1e-4, rtol=1e-4)

    # bf16 fast path (weights pre-cast once in pad_params, f32 accumulation);
    # validated against the f32 reference with a loose tolerance.
    out_bf16 = jax.block_until_ready(
        feature_discriminator_forward(x2, pparams, require="critic", use_bf16=True))
    assert out_bf16.shape == (B2,)
    assert bool(jnp.all(jnp.isfinite(out_bf16)))
    assert jnp.allclose(out_bf16, ref2, atol=2e-2, rtol=2e-2)

    print("KERNEL_OK")
</pallas_src>

<mosaic_0001>
module attributes {stable_mosaic.version = 11 : i64} {
  func.func @_head_kernel(%arg0: i32, %arg1: memref<2x1024xf32, #tpu.memory_space<vmem>>, %arg2: memref<1024x512xf32, #tpu.memory_space<vmem>>, %arg3: memref<1x512xf32, #tpu.memory_space<vmem>>, %arg4: memref<512x256xf32, #tpu.memory_space<vmem>>, %arg5: memref<1x256xf32, #tpu.memory_space<vmem>>, %arg6: memref<256x128xf32, #tpu.memory_space<vmem>>, %arg7: memref<1x128xf32, #tpu.memory_space<vmem>>, %arg8: memref<8x128xf32, #tpu.memory_space<vmem>>, %arg9: memref<8x1xf32, #tpu.memory_space<vmem>>, %arg10: memref<8x2xf32, #tpu.memory_space<vmem>>) attributes {dimension_semantics = [#tpu.dimension_semantics<parallel>], iteration_bounds = array<i64: 1>, scalar_prefetch = 0 : i64, scratch_operands = 0 : i64, tpu.core_type = #tpu.core_type<tc>, window_params = [{transform_indices = @transform_0, window_bounds = array<i64: 2, 1024>}, {pipeline_mode = #tpu.pipeline_mode<synchronous>, transform_indices = @transform_1, window_bounds = array<i64: 1024, 512>}, {pipeline_mode = #tpu.pipeline_mode<synchronous>, transform_indices = @transform_2, window_bounds = array<i64: 1, 512>}, {pipeline_mode = #tpu.pipeline_mode<synchronous>, transform_indices = @transform_3, window_bounds = array<i64: 512, 256>}, {pipeline_mode = #tpu.pipeline_mode<synchronous>, transform_indices = @transform_4, window_bounds = array<i64: 1, 256>}, {pipeline_mode = #tpu.pipeline_mode<synchronous>, transform_indices = @transform_5, window_bounds = array<i64: 256, 128>}, {pipeline_mode = #tpu.pipeline_mode<synchronous>, transform_indices = @transform_6, window_bounds = array<i64: 1, 128>}, {pipeline_mode = #tpu.pipeline_mode<synchronous>, transform_indices = @transform_7, window_bounds = array<i64: 8, 128>}, {pipeline_mode = #tpu.pipeline_mode<synchronous>, transform_indices = @transform_8, window_bounds = array<i64: 8, 1>}, {transform_indices = @transform_9, window_bounds = array<i64: 8, 2>}]} {
    %c0 = arith.constant 0 : index
    %c0_0 = arith.constant 0 : index
    %0 = vector.load %arg1[%c0, %c0_0] : memref<2x1024xf32, #tpu.memory_space<vmem>>, vector<2x1024xf32>
    %c0_1 = arith.constant 0 : index
    %c0_2 = arith.constant 0 : index
    %1 = vector.load %arg2[%c0_1, %c0_2] : memref<1024x512xf32, #tpu.memory_space<vmem>>, vector<1024x512xf32>
    %cst = arith.constant dense<0.000000e+00> : vector<2x512xf32>
    %2 = tpu.matmul %0, %1, %cst {dimension_numbers = #tpu.dot_dimension_numbers<[1], [0], [0], [1], [0, 0, 1, 1], [], []>} : vector<2x1024xf32>, vector<1024x512xf32>, vector<2x512xf32> -> vector<2x512xf32>
    %c0_3 = arith.constant 0 : index
    %c0_4 = arith.constant 0 : index
    %3 = vector.load %arg3[%c0_3, %c0_4] : memref<1x512xf32, #tpu.memory_space<vmem>>, vector<1x512xf32>
    %4 = vector.broadcast %3 : vector<1x512xf32> to vector<2x512xf32>
    %5 = arith.addf %2, %4 : vector<2x512xf32>
    %cst_5 = arith.constant 0.000000e+00 : f32
    %6 = vector.broadcast %cst_5 : f32 to vector<2x512xf32>
    %7 = arith.maximumf %5, %6 : vector<2x512xf32>
    %c0_6 = arith.constant 0 : index
    %c0_7 = arith.constant 0 : index
    %8 = vector.load %arg4[%c0_6, %c0_7] : memref<512x256xf32, #tpu.memory_space<vmem>>, vector<512x256xf32>
    %cst_8 = arith.constant dense<0.000000e+00> : vector<2x256xf32>
    %9 = tpu.matmul %7, %8, %cst_8 {dimension_numbers = #tpu.dot_dimension_numbers<[1], [0], [0], [1], [0, 0, 1, 1], [], []>} : vector<2x512xf32>, vector<512x256xf32>, vector<2x256xf32> -> vector<2x256xf32>
    %c0_9 = arith.constant 0 : index
    %c0_10 = arith.constant 0 : index
    %10 = vector.load %arg5[%c0_9, %c0_10] : memref<1x256xf32, #tpu.memory_space<vmem>>, vector<1x256xf32>
    %11 = vector.broadcast %10 : vector<1x256xf32> to vector<2x256xf32>
    %12 = arith.addf %9, %11 : vector<2x256xf32>
    %cst_11 = arith.constant 0.000000e+00 : f32
    %13 = vector.broadcast %cst_11 : f32 to vector<2x256xf32>
    %14 = arith.maximumf %12, %13 : vector<2x256xf32>
    %c0_12 = arith.constant 0 : index
    %c0_13 = arith.constant 0 : index
    %15 = vector.load %arg6[%c0_12, %c0_13] : memref<256x128xf32, #tpu.memory_space<vmem>>, vector<256x128xf32>
    %cst_14 = arith.constant dense<0.000000e+00> : vector<2x128xf32>
    %16 = tpu.matmul %14, %15, %cst_14 {dimension_numbers = #tpu.dot_dimension_numbers<[1], [0], [0], [1], [0, 0, 1, 1], [], []>} : vector<2x256xf32>, vector<256x128xf32>, vector<2x128xf32> -> vector<2x128xf32>
    %c0_15 = arith.constant 0 : index
    %c0_16 = arith.constant 0 : index
    %17 = vector.load %arg7[%c0_15, %c0_16] : memref<1x128xf32, #tpu.memory_space<vmem>>, vector<1x128xf32>
    %18 = vector.broadcast %17 : vector<1x128xf32> to vector<2x128xf32>
    %19 = arith.addf %16, %18 : vector<2x128xf32>
    %cst_17 = arith.constant 0.000000e+00 : f32
    %20 = vector.broadcast %cst_17 : f32 to vector<2x128xf32>
    %21 = arith.maximumf %19, %20 : vector<2x128xf32>
    %c0_18 = arith.constant 0 : index
    %c0_19 = arith.constant 0 : index
    %22 = vector.load %arg8[%c0_18, %c0_19] : memref<8x128xf32, #tpu.memory_space<vmem>>, vector<8x128xf32>
    %cst_20 = arith.constant dense<0.000000e+00> : vector<8x2xf32>
    %23 = tpu.matmul %22, %21, %cst_20 {dimension_numbers = #tpu.dot_dimension_numbers<[1], [1], [0], [0], [0, 0, 1, 0], [], []>} : vector<8x128xf32>, vector<2x128xf32>, vector<8x2xf32> -> vector<8x2xf32>
    %c0_21 = arith.constant 0 : index
    %c0_22 = arith.constant 0 : index
    %24 = vector.load %arg9[%c0_21, %c0_22] : memref<8x1xf32, #tpu.memory_space<vmem>>, vector<8x1xf32>
    %25 = vector.broadcast %24 : vector<8x1xf32> to vector<8x2xf32>
    %26 = arith.addf %23, %25 : vector<8x2xf32>
    %c0_23 = arith.constant 0 : index
    %c0_24 = arith.constant 0 : index
    %27 = vector.load %arg10[%c0_23, %c0_24] : memref<8x2xf32, #tpu.memory_space<vmem>>, vector<8x2xf32>
    tpu.vector_store %arg10[%c0_23, %c0_24], %26 {strides = array<i32>} : memref<8x2xf32, #tpu.memory_space<vmem>>, vector<8x2xf32>,
    return
  }
  func.func @transform_0(%arg0: i32) -> (i32, i32) {
    %c0_i32 = arith.constant 0 : i32
    %c0_i32_0 = arith.constant 0 : i32
    return %arg0, %c0_i32 : i32, i32
  }
  func.func @transform_1(%arg0: i32) -> (i32, i32) {
    %c0_i32 = arith.constant 0 : i32
    %c0_i32_0 = arith.constant 0 : i32
    %c0_i32_1 = arith.constant 0 : i32
    return %c0_i32, %c0_i32_0 : i32, i32
  }
  func.func @transform_2(%arg0: i32) -> (i32, i32) {
    %c0_i32 = arith.constant 0 : i32
    %c0_i32_0 = arith.constant 0 : i32
    %c0_i32_1 = arith.constant 0 : i32
    return %c0_i32, %c0_i32_0 : i32, i32
  }
  func.func @transform_3(%arg0: i32) -> (i32, i32) {
    %c0_i32 = arith.constant 0 : i32
    %c0_i32_0 = arith.constant 0 : i32
    %c0_i32_1 = arith.constant 0 : i32
    return %c0_i32, %c0_i32_0 : i32, i32
  }
  func.func @transform_4(%arg0: i32) -> (i32, i32) {
    %c0_i32 = arith.constant 0 : i32
    %c0_i32_0 = arith.constant 0 : i32
    %c0_i32_1 = arith.constant 0 : i32
    return %c0_i32, %c0_i32_0 : i32, i32
  }
  func.func @transform_5(%arg0: i32) -> (i32, i32) {
    %c0_i32 = arith.constant 0 : i32
    %c0_i32_0 = arith.constant 0 : i32
    %c0_i32_1 = arith.constant 0 : i32
    return %c0_i32, %c0_i32_0 : i32, i32
  }
  func.func @transform_6(%arg0: i32) -> (i32, i32) {
    %c0_i32 = arith.constant 0 : i32
    %c0_i32_0 = arith.constant 0 : i32
    %c0_i32_1 = arith.constant 0 : i32
    return %c0_i32, %c0_i32_0 : i32, i32
  }
  func.func @transform_7(%arg0: i32) -> (i32, i32) {
    %c0_i32 = arith.constant 0 : i32
    %c0_i32_0 = arith.constant 0 : i32
    %c0_i32_1 = arith.constant 0 : i32
    return %c0_i32, %c0_i32_0 : i32, i32
  }
  func.func @transform_8(%arg0: i32) -> (i32, i32) {
    %c0_i32 = arith.constant 0 : i32
    %c0_i32_0 = arith.constant 0 : i32
    %c0_i32_1 = arith.constant 0 : i32
    return %c0_i32, %c0_i32_0 : i32, i32
  }
  func.func @transform_9(%arg0: i32) -> (i32, i32) {
    %c0_i32 = arith.constant 0 : i32
    %c0_i32_0 = arith.constant 0 : i32
    return %c0_i32, %arg0 : i32, i32
  }
}

</mosaic_0001>

<bundles_post_ra>
// kernel: tpu_custom_call.1
= control target key start
LH: loop header
LB: loop body
LE: loop exit
PB: predicated region body
PF: predicated region fallthrough
CT: control target
= control target key end

     0   :  { %14 = vsyncpa [#allocation3], 0  ;;  %s2955_s0 = inlined_call_operand.hbm [shape: f32[2,1024], index: 0, kind: input, shape index: {}]   ;;  %s2956_s1 = inlined_call_operand.hbm [shape: f32[1024,512], index: 1, kind: input, shape index: {}]   ;;  %s2957_s2 = inlined_call_operand.hbm [shape: f32[1,512], index: 2, kind: input, shape index: {}]   ;;  %s2958_s3 = inlined_call_operand.hbm [shape: f32[512,256], index: 3, kind: input, shape index: {}]   ;;  %s2959_s4 = inlined_call_operand.hbm [shape: f32[1,256], index: 4, kind: input, shape index: {}]   ;;  %s2960_s5 = inlined_call_operand.hbm [shape: f32[256,128], index: 5, kind: input, shape index: {}]   ;;  %s2961_s6 = inlined_call_operand.hbm [shape: f32[1,128], index: 6, kind: input, shape index: {}]   ;;  %s2962_s7 = inlined_call_operand.hbm [shape: f32[8,128], index: 7, kind: input, shape index: {}]   ;;  %s2963_s8 = inlined_call_operand.vmem [shape: f32[8,1], index: 8, kind: input, shape index: {}]   ;;  %s2964_s9 = inlined_call_operand.vmem [shape: f32[8,2], index: 9, kind: output, shape index: {}]  }
   0x1   :  { %15 = vsyncpa [#allocation5], 0 }
   0x2   :  { %16 = vsyncpa [#allocation8], 0 }
   0x3   :  { %17 = vsyncpa [#allocation11], 0 }
   0x4   :  { %18 = vsyncpa [#allocation14], 0  ;;  %s2707_s30 = smov [#allocation4]   ;;  %s2521_s13 = scalar_lea.hbm %s2956_s1, 65536 }
   0x5   :  { %s34_s10 = sshll.u32 %s2707_s30, 4  ;;  %p2522_p0 = scmp.ne.s32.totalorder %s2956_s1, %s2521_s13  ;;  %s35_s10 = int_to_ptr.vmem [resolvable:$true] %s34_s10 }
   0x6   :  { %p2525_p1 = scmp.lt.u32.totalorder %s2521_s13, %s2956_s1 }
   0x8   :  { %p2527_p2 = pnand %p2525_p1, %p2522_p0 }
   0xa   :  { %2530 = shalt.err (!%p2527_p2)
}
   0xb   :  { %s2531_s18 = scalar_lea.vmem %s35_s10, 65536  ;;  %p2536_p4 = scmp.lt.s32.totalorder %s35_s10, %s35_s10 }
   0xc   :  { %p2532_p3 = scmp.ne.s32.totalorder %s35_s10, %s2531_s18  ;;  %p2537_p5 = scmp.lt.s32.totalorder %s2531_s18, %s2531_s18 }
   0xe   :  { %p2538_p6 = por %p2537_p5, %p2536_p4 }
  0x10   :  { %p2539_p7 = pnand %p2538_p6, %p2532_p3 }
  0x12   :  { %2542 = shalt.err (!%p2539_p7)
}
  0x13   :  { %s2708_s19 = smov 512   ;;  %s2709_s20 = smov 32  }
  0x14   :  { %40 = dma.hbm_to_vmem [thread:$0]  %s2956_s1, 65536, %s35_s10, [#allocation5], %s2708_s19, %s2708_s19, %s2709_s20  }
  0x15   :  { %s2710_s23 = smov [#allocation7]   ;;  %s2543_s27 = scalar_lea.hbm %s2958_s3, 16384 }
  0x16   :  { %s56_s24 = sshll.u32 %s2710_s23, 4  ;;  %p2544_p8 = scmp.ne.s32.totalorder %s2958_s3, %s2543_s27  ;;  %s57_s24 = int_to_ptr.vmem [resolvable:$true] %s56_s24 }
  0x17   :  { %p2547_p9 = scmp.lt.u32.totalorder %s2543_s27, %s2958_s3 }
  0x19   :  { %p2549_p10 = pnand %p2547_p9, %p2544_p8 }
  0x1b   :  { %2552 = shalt.err (!%p2549_p10)
}
  0x1c   :  { %s2553_s12 = scalar_lea.vmem %s57_s24, 16384  ;;  %p2558_p12 = scmp.lt.s32.totalorder %s57_s24, %s57_s24 }
  0x1d   :  { %p2554_p11 = scmp.ne.s32.totalorder %s57_s24, %s2553_s12  ;;  %p2559_p13 = scmp.lt.s32.totalorder %s2553_s12, %s2553_s12 }
  0x1f   :  { %p2560_p0 = por %p2559_p13, %p2558_p12 }
  0x21   :  { %p2561_p1 = pnand %p2560_p0, %p2554_p11 }
  0x23   :  { %2564 = shalt.err (!%p2561_p1)
}
  0x24   :  { %s2711_s1 = smov 256   ;;  %s2712_s10 = smov 16  }
  0x25   :  { %62 = dma.hbm_to_vmem [thread:$0]  %s2958_s3, 16384, %s57_s24, [#allocation8], %s2711_s1, %s2711_s1, %s2712_s10  }
  0x26   :  { %s2713_s15 = smov [#allocation10]   ;;  %s2565_s19 = scalar_lea.hbm %s2960_s5, 4096 }
  0x27   :  { %s78_s16 = sshll.u32 %s2713_s15, 4  ;;  %p2566_p2 = scmp.ne.s32.totalorder %s2960_s5, %s2565_s19  ;;  %s79_s16 = int_to_ptr.vmem [resolvable:$true] %s78_s16 }
  0x28   :  { %p2569_p3 = scmp.lt.u32.totalorder %s2565_s19, %s2960_s5 }
  0x2a   :  { %p2571_p4 = pnand %p2569_p3, %p2566_p2 }
  0x2c   :  { %2574 = shalt.err (!%p2571_p4)
}
  0x2d   :  { %s2575_s25 = scalar_lea.vmem %s79_s16, 4096  ;;  %p2580_p6 = scmp.lt.s32.totalorder %s79_s16, %s79_s16 }
  0x2e   :  { %p2576_p5 = scmp.ne.s32.totalorder %s79_s16, %s2575_s25  ;;  %p2581_p7 = scmp.lt.s32.totalorder %s2575_s25, %s2575_s25 }
  0x30   :  { %p2582_p8 = por %p2581_p7, %p2580_p6 }
  0x32   :  { %p2583_p9 = pnand %p2582_p8, %p2576_p5 }
  0x34   :  { %2586 = shalt.err (!%p2583_p9)
}
  0x35   :  { %s2714_s3 = smov 128   ;;  %s2715_s24 = smov 8  }
  0x36   :  { %84 = dma.hbm_to_vmem [thread:$0]  %s2960_s5, 4096, %s79_s16, [#allocation11], %s2714_s3, %s2714_s3, %s2715_s24  }
  0x37   :  { %s2716_s28 = smov [#allocation2]   ;;  %s2717_s30 = smov [#allocation6]  }
  0x38   :  { %s25_s29 = sshll.u32 %s2716_s28, 4  ;;  %s47_s11 = sshll.u32 %s2717_s30, 4  ;;  %s26_s29 = int_to_ptr.vmem [resolvable:$true] %s25_s29  ;;  %s48_s11 = int_to_ptr.vmem [resolvable:$true] %s47_s11 }
  0x39   :  { %s2587_s10 = scalar_lea.hbm %s2955_s0, 256 }
  0x3a   :  { %p2588_p10 = scmp.ne.s32.totalorder %s2955_s0, %s2587_s10  ;;  %p2591_p11 = scmp.lt.u32.totalorder %s2587_s10, %s2955_s0 }
  0x3c   :  { %p2593_p12 = pnand %p2591_p11, %p2588_p10 }
  0x3e   :  { %2596 = shalt.err (!%p2593_p12)
}
  0x3f   :  { %s2597_s5 = scalar_lea.vmem %s26_s29, 256  ;;  %p2602_p0 = scmp.lt.s32.totalorder %s26_s29, %s26_s29 }
  0x40   :  { %p2598_p13 = scmp.ne.s32.totalorder %s26_s29, %s2597_s5  ;;  %p2603_p1 = scmp.lt.s32.totalorder %s2597_s5, %s2597_s5 }
  0x42   :  { %p2604_p2 = por %p2603_p1, %p2602_p0 }
  0x44   :  { %p2605_p3 = pnand %p2604_p2, %p2598_p13 }
  0x46   :  { %2608 = shalt.err (!%p2605_p3)
}
  0x47   :  { %28 = dma.hbm_to_vmem [thread:$0]  %s2955_s0, 256, %s26_s29, [#allocation3]  }
  0x48   :  { %s2609_s21 = scalar_lea.hbm %s2957_s2, 64 }
  0x49   :  { %p2610_p4 = scmp.ne.s32.totalorder %s2957_s2, %s2609_s21  ;;  %p2613_p5 = scmp.lt.u32.totalorder %s2609_s21, %s2957_s2 }
  0x4b   :  { %p2615_p6 = pnand %p2613_p5, %p2610_p4 }
  0x4d   :  { %2618 = shalt.err (!%p2615_p6)
}
  0x4e   :  { %s2619_s24 = scalar_lea.vmem %s48_s11, 64  ;;  %p2624_p8 = scmp.lt.s32.totalorder %s48_s11, %s48_s11 }
  0x4f   :  { %p2620_p7 = scmp.ne.s32.totalorder %s48_s11, %s2619_s24  ;;  %p2625_p9 = scmp.lt.s32.totalorder %s2619_s24, %s2619_s24 }
  0x51   :  { %p2626_p10 = por %p2625_p9, %p2624_p8 }
  0x53   :  { %p2627_p11 = pnand %p2626_p10, %p2620_p7 }
  0x55   :  { %2630 = shalt.err (!%p2627_p11)
}
  0x56   :  { %50 = dma.hbm_to_vmem [thread:$0]  %s2957_s2, 64, %s48_s11, [#allocation5]  }
  0x57   :  { %s2718_s27 = smov [#allocation9]   ;;  %s2719_s29 = smov [#allocation12]  }
  0x58   :  { %s69_s28 = sshll.u32 %s2718_s27, 4  ;;  %s91_s30 = sshll.u32 %s2719_s29, 4  ;;  %s70_s28 = int_to_ptr.vmem [resolvable:$true] %s69_s28  ;;  %s92_s30 = int_to_ptr.vmem [resolvable:$true] %s91_s30 }
  0x59   :  { %s2631_s10 = scalar_lea.hbm %s2959_s4, 32 }
  0x5a   :  { %p2632_p12 = scmp.ne.s32.totalorder %s2959_s4, %s2631_s10  ;;  %p2635_p13 = scmp.lt.u32.totalorder %s2631_s10, %s2959_s4 }
  0x5c   :  { %p2637_p0 = pnand %p2635_p13, %p2632_p12 }
  0x5e   :  { %2640 = shalt.err (!%p2637_p0)
}
  0x5f   :  { %s2641_s2 = scalar_lea.vmem %s70_s28, 32  ;;  %p2646_p2 = scmp.lt.s32.totalorder %s70_s28, %s70_s28 }
  0x60   :  { %p2642_p1 = scmp.ne.s32.totalorder %s70_s28, %s2641_s2  ;;  %p2647_p3 = scmp.lt.s32.totalorder %s2641_s2, %s2641_s2 }
  0x62   :  { %p2648_p4 = por %p2647_p3, %p2646_p2 }
  0x64   :  { %p2649_p5 = pnand %p2648_p4, %p2642_p1 }
  0x66   :  { %2652 = shalt.err (!%p2649_p5)
}
  0x67   :  { %72 = dma.hbm_to_vmem [thread:$0]  %s2959_s4, 32, %s70_s28, [#allocation8]  }
  0x68   :  { %s2653_s19 = scalar_lea.hbm %s2961_s6, 16 }
  0x69   :  { %p2654_p6 = scmp.ne.s32.totalorder %s2961_s6, %s2653_s19  ;;  %p2657_p7 = scmp.lt.u32.totalorder %s2653_s19, %s2961_s6 }
  0x6b   :  { %p2659_p8 = pnand %p2657_p7, %p2654_p6 }
  0x6d   :  { %2662 = shalt.err (!%p2659_p8)
}
  0x6e   :  { %s2663_s25 = scalar_lea.vmem %s92_s30, 16  ;;  %s2667_s3 = scalar_lea.vmem %s92_s30, 32 }
  0x6f   :  { %p2664_p9 = scmp.ne.s32.totalorder %s92_s30, %s2663_s25  ;;  %p2668_p10 = scmp.lt.s32.totalorder %s92_s30, %s92_s30 }
  0x70   :  { %p2669_p11 = scmp.lt.s32.totalorder %s2667_s3, %s2663_s25 }
  0x72   :  { %p2670_p12 = por %p2669_p11, %p2668_p10 }
  0x74   :  { %p2671_p13 = pnand %p2670_p12, %p2664_p9 }
  0x76   :  { %2674 = shalt.err (!%p2671_p13)
}
  0x77   :  { %94 = dma.hbm_to_vmem [thread:$0]  %s2961_s6, 16, %s92_s30, [#allocation11]  }
  0x78   :  { %s2720_s0 = smov [#allocation13]   ;;  %s2675_s29 = scalar_lea.hbm %s2962_s7, 128 }
  0x79   :  { %s101_s26 = sshll.u32 %s2720_s0, 4  ;;  %p2676_p0 = scmp.ne.s32.totalorder %s2962_s7, %s2675_s29  ;;  %s102_s26 = int_to_ptr.vmem [resolvable:$true] %s101_s26 }
  0x7a   :  { %p2679_p1 = scmp.lt.u32.totalorder %s2675_s29, %s2962_s7 }
  0x7c   :  { %p2681_p2 = pnand %p2679_p1, %p2676_p0 }
  0x7e   :  { %2684 = shalt.err (!%p2681_p2)
}
  0x7f   :  { %s2685_s14 = scalar_lea.vmem %s102_s26, 128  ;;  %p2690_p4 = scmp.lt.s32.totalorder %s102_s26, %s102_s26 }
  0x80   :  { %p2686_p3 = scmp.ne.s32.totalorder %s102_s26, %s2685_s14  ;;  %p2691_p5 = scmp.lt.s32.totalorder %s2685_s14, %s2685_s14 }
  0x82   :  { %p2692_p6 = por %p2691_p5, %p2690_p4 }
  0x84   :  { %p2693_p7 = pnand %p2692_p6, %p2686_p3 }
  0x86   :  { %2696 = shalt.err (!%p2693_p7)
}
  0x87   :  { %104 = dma.hbm_to_vmem [thread:$0]  %s2962_s7, 128, %s102_s26, [#allocation14]  }
  0x88   :  { %2697 = dma.done.wait [#allocation3], 256  }
  0x89   :  { %2698 = vsyncadd [#allocation3], 4294967040 }
  0x8a   :  { %2699 = dma.done.wait [#allocation5], 65600  }
  0x8b   :  { %2700 = vsyncadd [#allocation5], 4294901696 }
  0x8c   :  { %2701 = dma.done.wait [#allocation8], 16416  }
  0x8d   :  { %2702 = vsyncadd [#allocation8], 4294950880 }
  0x8e   :  { %2703 = dma.done.wait [#allocation11], 4112  }
  0x8f   :  { %2704 = vsyncadd [#allocation11], 4294963184 }
  0x90   :  { %2705 = dma.done.wait [#allocation14], 128  }
  0x91   :  { %2706 = vsyncadd [#allocation14], 4294967168  ;;  %v134_v0 = vld [vmem:[#allocation4 + $0x8] sm:$0xff]  ;;  %v133_v5 = vld [vmem:[#allocation4] sm:$0xff]  ;;  %vm2723_vm0 = vmmov 0   ;;  %vm1754_vm1 = vcmask 15360  }
  0x92   :  { %v138_v1 = vld [vmem:[#allocation4 + $0x28] sm:$0xff]  ;;  %v137_v6 = vld [vmem:[#allocation4 + $0x20] sm:$0xff] }
  0x93   :  { %v262_v2 = vld [vmem:[#allocation4 + $0x408] sm:$0xff]  ;;  %v1808_v3 = vpack.c.bf16 %v138_v1, %v134_v0  ;;  %v1810_v8 = vpack.c.bf16 %v137_v6, %v133_v5  ;;  %v261_v9 = vld [vmem:[#allocation4 + $0x400] sm:$0xff] }
  0x94   :  { %v266_v4 = vld [vmem:[#allocation4 + $0x428] sm:$0xff]  ;;  %v265_v10 = vld [vmem:[#allocation4 + $0x420] sm:$0xff] }
  0x95   :  { %v1872_v7 = vpack.c.bf16 %v266_v4, %v262_v2  ;;  %v142_v11 = vld [vmem:[#allocation4 + $0x48] sm:$0xff]  ;;  %1809 = vmatprep.subr.bf16.mxu1 %v1808_v3  ;;  %v1874_v12 = vpack.c.bf16 %v265_v10, %v261_v9  ;;  %v141_v18 = vld [vmem:[#allocation4 + $0x40] sm:$0xff] }
  0x96   :  { %v146_v13 = vld [vmem:[#allocation4 + $0x68] sm:$0xff]  ;;  %1811 = vmatpush1.bf16.msra.mxu1 %v1810_v8  ;;  %v145_v19 = vld [vmem:[#allocation4 + $0x60] sm:$0xff] }
  0x97   :  { %v270_v14 = vld [vmem:[#allocation4 + $0x448] sm:$0xff]  ;;  %1873 = vmatprep.subr.bf16.mxu0 %v1872_v7  ;;  %v1812_v16 = vpack.c.bf16 %v146_v13, %v142_v11  ;;  %v269_v20 = vld [vmem:[#allocation4 + $0x440] sm:$0xff]  ;;  %v1814_v21 = vpack.c.bf16 %v145_v19, %v141_v18 }
  0x98   :  { %v274_v15 = vld [vmem:[#allocation4 + $0x468] sm:$0xff]  ;;  %1875 = vmatpush1.bf16.msra.mxu0 %v1874_v12  ;;  %v273_v22 = vld [vmem:[#allocation4 + $0x460] sm:$0xff] }
  0x99   :  { %v1876_v17 = vpack.c.bf16 %v274_v15, %v270_v14  ;;  %v150_v23 = vld [vmem:[#allocation4 + $0x88] sm:$0xff]  ;;  %1813 = vmatprep.subr.bf16.mxu1 %v1812_v16  ;;  %v1878_v25 = vpack.c.bf16 %v273_v22, %v269_v20  ;;  %v149_v29 = vld [vmem:[#allocation4 + $0x80] sm:$0xff] }
  0x9a   :  { %v154_v24 = vld [vmem:[#allocation4 + $0xa8] sm:$0xff]  ;;  %v153_v31 = vld [vmem:[#allocation4 + $0xa0] sm:$0xff]  ;;  %1815 = vmatpush1.bf16.msra.mxu1 %v1814_v21 }
  0x9b   :  { %1877 = vmatprep.subr.bf16.mxu0 %v1876_v17  ;;  %v1816_v26 = vpack.c.bf16 %v154_v24, %v150_v23  ;;  %v278_v27 = vld [vmem:[#allocation4 + $0x488] sm:$0xff]  ;;  %v277_v32 = vld [vmem:[#allocation4 + $0x480] sm:$0xff]  ;;  %v1818_v34 = vpack.c.bf16 %v153_v31, %v149_v29 }
  0x9c   :  { %v282_v28 = vld [vmem:[#allocation4 + $0x4a8] sm:$0xff]  ;;  %v281_v33 = vld [vmem:[#allocation4 + $0x4a0] sm:$0xff]  ;;  %1879 = vmatpush1.bf16.msra.mxu0 %v1878_v25 }
  0x9d   :  { %v1880_v30 = vpack.c.bf16 %v282_v28, %v278_v27  ;;  %v158_v35 = vld [vmem:[#allocation4 + $0xc8] sm:$0xff]  ;;  %1817 = vmatprep.subr.bf16.mxu1 %v1816_v26  ;;  %v1882_v38 = vpack.c.bf16 %v281_v33, %v277_v32  ;;  %v157_v41 = vld [vmem:[#allocation4 + $0xc0] sm:$0xff] }
  0x9e   :  { %v162_v36 = vld [vmem:[#allocation4 + $0xe8] sm:$0xff]  ;;  %v161_v42 = vld [vmem:[#allocation4 + $0xe0] sm:$0xff]  ;;  %1819 = vmatpush1.bf16.msra.mxu1 %v1818_v34 }
  0x9f   :  { %v286_v37 = vld [vmem:[#allocation4 + $0x4c8] sm:$0xff]  ;;  %v1820_v39 = vpack.c.bf16 %v162_v36, %v158_v35  ;;  %1881 = vmatprep.subr.bf16.mxu0 %v1880_v30  ;;  %v285_v44 = vld [vmem:[#allocation4 + $0x4c0] sm:$0xff]  ;;  %v1822_v50 = vpack.c.bf16 %v161_v42, %v157_v41 }
  0xa0   :  { %v290_v40 = vld [vmem:[#allocation4 + $0x4e8] sm:$0xff]  ;;  %v289_v45 = vld [vmem:[#allocation4 + $0x4e0] sm:$0xff]  ;;  %1883 = vmatpush1.bf16.msra.mxu0 %v1882_v38 }
  0xa1   :  { %v1884_v43 = vpack.c.bf16 %v290_v40, %v286_v37  ;;  %v166_v46 = vld [vmem:[#allocation4 + $0x108] sm:$0xff]  ;;  %1821 = vmatprep.subr.bf16.mxu1 %v1820_v39  ;;  %v1886_v51 = vpack.c.bf16 %v289_v45, %v285_v44  ;;  %v165_v53 = vld [vmem:[#allocation4 + $0x100] sm:$0xff] }
  0xa2   :  { %v170_v47 = vld [vmem:[#allocation4 + $0x128] sm:$0xff]  ;;  %v169_v54 = vld [vmem:[#allocation4 + $0x120] sm:$0xff]  ;;  %1823 = vmatpush1.bf16.msra.mxu1 %v1822_v50 }
  0xa3   :  { %v294_v48 = vld [vmem:[#allocation4 + $0x508] sm:$0xff]  ;;  %v1824_v52 = vpack.c.bf16 %v170_v47, %v166_v46  ;;  %v293_v55 = vld [vmem:[#allocation4 + $0x500] sm:$0xff]  ;;  %1885 = vmatprep.subr.bf16.mxu0 %v1884_v43  ;;  %v1826_v62 = vpack.c.bf16 %v169_v54, %v165_v53  ;;  %v647_v46 = vlaneseq  ;;  %v2721_v47 = vmov 1983009808  }
  0xa4   :  { %v298_v49 = vld [vmem:[#allocation4 + $0x528] sm:$0xff]  ;;  %v297_v57 = vld [vmem:[#allocation4 + $0x520] sm:$0xff]  ;;  %1887 = vmatpush1.bf16.msra.mxu0 %v1886_v51 }
  0xa5   :  { %v1888_v56 = vpack.c.bf16 %v298_v49, %v294_v48  ;;  %v174_v58 = vld [vmem:[#allocation4 + $0x148] sm:$0xff]  ;;  %1825 = vmatprep.subr.bf16.mxu1 %v1824_v52  ;;  %v1890_v63 = vpack.c.bf16 %v297_v57, %v293_v55  ;;  %v173_v1 = vld [vmem:[#allocation4 + $0x140] sm:$0xff]  ;;  %v671_v48 = vunpack.c.l.s4 %v2721_v47 }
  0xa6   :  { %v178_v59 = vld [vmem:[#allocation4 + $0x168] sm:$0xff]  ;;  %v177_v2 = vld [vmem:[#allocation4 + $0x160] sm:$0xff]  ;;  %1827 = vmatpush1.bf16.msra.mxu1 %v1826_v62 }
  0xa7   :  { %v302_v60 = vld [vmem:[#allocation4 + $0x548] sm:$0xff]  ;;  %v1828_v0 = vpack.c.bf16 %v178_v59, %v174_v58  ;;  %v301_v3 = vld [vmem:[#allocation4 + $0x540] sm:$0xff]  ;;  %1889 = vmatprep.subr.bf16.mxu0 %v1888_v56  ;;  %v1830_v10 = vpack.c.bf16 %v177_v2, %v173_v1  ;;  %v672_v62 = vunpack.c.0.s8 %v671_v48 }
  0xa8   :  { %v306_v61 = vld [vmem:[#allocation4 + $0x568] sm:$0xff]  ;;  %v305_v5 = vld [vmem:[#allocation4 + $0x560] sm:$0xff]  ;;  %1891 = vmatpush1.bf16.msra.mxu0 %v1890_v63 }
  0xa9   :  { %v1892_v4 = vpack.c.bf16 %v306_v61, %v302_v60  ;;  %v182_v6 = vld [vmem:[#allocation4 + $0x188] sm:$0xff]  ;;  %1829 = vmatprep.subr.bf16.mxu1 %v1828_v0  ;;  %v1894_v11 = vpack.c.bf16 %v305_v5, %v301_v3  ;;  %v181_v13 = vld [vmem:[#allocation4 + $0x180] sm:$0xff]  ;;  %v2871_v61 = vshrl.u32 %v647_v46, 7 }
  0xaa   :  { %v186_v7 = vld [vmem:[#allocation4 + $0x1a8] sm:$0xff]  ;;  %v185_v14 = vld [vmem:[#allocation4 + $0x1a0] sm:$0xff]  ;;  %1831 = vmatpush1.bf16.msra.mxu1 %v1830_v10 }
  0xab   :  { %v310_v8 = vld [vmem:[#allocation4 + $0x588] sm:$0xff]  ;;  %v1832_v12 = vpack.c.bf16 %v186_v7, %v182_v6  ;;  %v309_v15 = vld [vmem:[#allocation4 + $0x580] sm:$0xff]  ;;  %1893 = vmatprep.subr.bf16.mxu0 %v1892_v4  ;;  %v1834_v22 = vpack.c.bf16 %v185_v14, %v181_v13 }
  0xac   :  { %v314_v9 = vld [vmem:[#allocation4 + $0x5a8] sm:$0xff]  ;;  %v313_v17 = vld [vmem:[#allocation4 + $0x5a0] sm:$0xff]  ;;  %1895 = vmatpush1.bf16.msra.mxu0 %v1894_v11  ;;  %v2874_v11 = vsub.s32 %v672_v62, %v2871_v61 }
  0xad   :  { %v1896_v16 = vpack.c.bf16 %v314_v9, %v310_v8  ;;  %v190_v18 = vld [vmem:[#allocation4 + $0x1c8] sm:$0xff]  ;;  %1833 = vmatprep.subr.bf16.mxu1 %v1832_v12  ;;  %v1898_v23 = vpack.c.bf16 %v313_v17, %v309_v15  ;;  %v189_v25 = vld [vmem:[#allocation4 + $0x1c0] sm:$0xff] }
  0xae   :  { %v194_v19 = vld [vmem:[#allocation4 + $0x1e8] sm:$0xff]  ;;  %v193_v26 = vld [vmem:[#allocation4 + $0x1e0] sm:$0xff]  ;;  %1835 = vmatpush1.bf16.msra.mxu1 %v1834_v22  ;;  %v131_v22 = vld [vmem:[#allocation2] sm:$0xff] }
  0xaf   :  { %v318_v20 = vld [vmem:[#allocation4 + $0x5c8] sm:$0xff]  ;;  %v1836_v24 = vpack.c.bf16 %v194_v19, %v190_v18  ;;  %v317_v27 = vld [vmem:[#allocation4 + $0x5c0] sm:$0xff]  ;;  %1897 = vmatprep.subr.bf16.mxu0 %v1896_v16  ;;  %v1838_v34 = vpack.c.bf16 %v193_v26, %v189_v25  ;;  %v2877_v25 = vrot.slane %v131_v22, %v2874_v11  ;;  %v669_v26 = vcombine.high %v131_v22, %v131_v22 }
  0xb0   :  { %v322_v21 = vld [vmem:[#allocation4 + $0x5e8] sm:$0xff]  ;;  %v321_v29 = vld [vmem:[#allocation4 + $0x5e0] sm:$0xff]  ;;  %1899 = vmatpush1.bf16.msra.mxu0 %v1898_v23 }
  0xb1   :  { %v1900_v28 = vpack.c.bf16 %v322_v21, %v318_v20  ;;  %v198_v30 = vld [vmem:[#allocation4 + $0x208] sm:$0xff]  ;;  %1837 = vmatprep.subr.bf16.mxu1 %v1836_v24  ;;  %v1902_v35 = vpack.c.bf16 %v321_v29, %v317_v27  ;;  %v197_v37 = vld [vmem:[#allocation4 + $0x200] sm:$0xff] }
  0xb2   :  { %v202_v31 = vld [vmem:[#allocation4 + $0x228] sm:$0xff]  ;;  %v201_v38 = vld [vmem:[#allocation4 + $0x220] sm:$0xff]  ;;  %1839 = vmatpush1.bf16.msra.mxu1 %v1838_v34  ;;  %v2884_v34 = vrot.slane %v669_v26, %v2874_v11  ;;  %v148_v26 = vld [vmem:[#allocation4 + $0x78] sm:$0xff] }
  0xb3   :  { %v326_v32 = vld [vmem:[#allocation4 + $0x608] sm:$0xff]  ;;  %v1840_v36 = vpack.c.bf16 %v202_v31, %v198_v30  ;;  %v325_v39 = vld [vmem:[#allocation4 + $0x600] sm:$0xff]  ;;  %1901 = vmatprep.subr.bf16.mxu0 %v1900_v28  ;;  %v1842_v49 = vpack.c.bf16 %v201_v38, %v197_v37 }
  0xb4   :  { %v330_v33 = vld [vmem:[#allocation4 + $0x628] sm:$0xff]  ;;  %v329_v41 = vld [vmem:[#allocation4 + $0x620] sm:$0xff]  ;;  %1903 = vmatpush1.bf16.msra.mxu0 %v1902_v35 }
  0xb5   :  { %v1904_v40 = vpack.c.bf16 %v330_v33, %v326_v32  ;;  %v206_v42 = vld [vmem:[#allocation4 + $0x248] sm:$0xff]  ;;  %1841 = vmatprep.subr.bf16.mxu1 %v1840_v36  ;;  %v1906_v50 = vpack.c.bf16 %v329_v41, %v325_v39  ;;  %v205_v52 = vld [vmem:[#allocation4 + $0x240] sm:$0xff]  ;;  %v2881_v33 = vcombine.high %v2877_v25, %v2877_v25  ;;  %v2889_v41 = vcombine.high %v2884_v34, %v2884_v34 }
  0xb6   :  { %v210_v43 = vld [vmem:[#allocation4 + $0x268] sm:$0xff]  ;;  %v209_v53 = vld [vmem:[#allocation4 + $0x260] sm:$0xff]  ;;  %1843 = vmatpush1.bf16.msra.mxu1 %v1842_v49 }
  0xb7   :  { %v334_v44 = vld [vmem:[#allocation4 + $0x648] sm:$0xff]  ;;  %v1844_v51 = vpack.c.bf16 %v210_v43, %v206_v42  ;;  %v333_v54 = vld [vmem:[#allocation4 + $0x640] sm:$0xff]  ;;  %1905 = vmatprep.subr.bf16.mxu0 %v1904_v40  ;;  %v1846_v63 = vpack.c.bf16 %v209_v53, %v205_v52  ;;  %775 = vmatprep.mubr.f32.mxu1 %v2881_v33 }
  0xb8   :  { %v338_v45 = vld [vmem:[#allocation4 + $0x668] sm:$0xff]  ;;  %v337_v56 = vld [vmem:[#allocation4 + $0x660] sm:$0xff]  ;;  %1907 = vmatpush1.bf16.msra.mxu0 %v1906_v50  ;;  %846 = vmatprep.mubr.f32.mxu0 %v2889_v41 }
  0xb9   :  { %v1908_v55 = vpack.c.bf16 %v338_v45, %v334_v44  ;;  %v214_v57 = vld [vmem:[#allocation4 + $0x288] sm:$0xff]  ;;  %1845 = vmatprep.subr.bf16.mxu1 %v1844_v51  ;;  %v1910_v0 = vpack.c.bf16 %v337_v56, %v333_v54  ;;  %v213_v2 = vld [vmem:[#allocation4 + $0x280] sm:$0xff] }
  0xba   :  { %v218_v58 = vld [vmem:[#allocation4 + $0x2a8] sm:$0xff]  ;;  %v217_v3 = vld [vmem:[#allocation4 + $0x2a0] sm:$0xff]  ;;  %1847 = vmatpush1.bf16.msra.mxu1 %v1846_v63 }
  0xbb   :  { %v342_v59 = vld [vmem:[#allocation4 + $0x688] sm:$0xff]  ;;  %v1848_v1 = vpack.c.bf16 %v218_v58, %v214_v57  ;;  %v341_v4 = vld [vmem:[#allocation4 + $0x680] sm:$0xff]  ;;  %1909 = vmatprep.subr.bf16.mxu0 %v1908_v55  ;;  %v1850_v12 = vpack.c.bf16 %v217_v3, %v213_v2 }
  0xbc   :  { %v346_v60 = vld [vmem:[#allocation4 + $0x6a8] sm:$0xff]  ;;  %v345_v6 = vld [vmem:[#allocation4 + $0x6a0] sm:$0xff]  ;;  %1911 = vmatpush1.bf16.msra.mxu0 %v1910_v0 }
  0xbd   :  { %v1912_v5 = vpack.c.bf16 %v346_v60, %v342_v59  ;;  %v222_v7 = vld [vmem:[#allocation4 + $0x2c8] sm:$0xff]  ;;  %v221_v13 = vld [vmem:[#allocation4 + $0x2c0] sm:$0xff]  ;;  %1849 = vmatprep.subr.bf16.mxu1 %v1848_v1  ;;  %v1914_v14 = vpack.c.bf16 %v345_v6, %v341_v4 }
  0xbe   :  { %v226_v8 = vld [vmem:[#allocation4 + $0x2e8] sm:$0xff]  ;;  %v225_v16 = vld [vmem:[#allocation4 + $0x2e0] sm:$0xff]  ;;  %1851 = vmatpush1.bf16.msra.mxu1 %v1850_v12  ;;  %v136_v12 = vld [vmem:[#allocation4 + $0x18] sm:$0xff] }
  0xbf   :  { %v350_v9 = vld [vmem:[#allocation4 + $0x6c8] sm:$0xff]  ;;  %v1852_v15 = vpack.c.bf16 %v226_v8, %v222_v7  ;;  %v349_v17 = vld [vmem:[#allocation4 + $0x6c0] sm:$0xff]  ;;  %1913 = vmatprep.subr.bf16.mxu0 %v1912_v5  ;;  %v1854_v27 = vpack.c.bf16 %v225_v16, %v221_v13  ;;  %v140_v13 = vld [vmem:[#allocation4 + $0x38] sm:$0xff] }
  0xc0   :  { %v354_v10 = vld [vmem:[#allocation4 + $0x6e8] sm:$0xff]  ;;  %v353_v18 = vld [vmem:[#allocation4 + $0x6e0] sm:$0xff]  ;;  %1915 = vmatpush1.bf16.msra.mxu0 %v1914_v14 }
  0xc1   :  { %v1916_v19 = vpack.c.bf16 %v354_v10, %v350_v9  ;;  %v230_v20 = vld [vmem:[#allocation4 + $0x308] sm:$0xff]  ;;  %v1918_v28 = vpack.c.bf16 %v353_v18, %v349_v17  ;;  %1853 = vmatprep.subr.bf16.mxu1 %v1852_v15  ;;  %v229_v30 = vld [vmem:[#allocation4 + $0x300] sm:$0xff]  ;;  %v2064_v18 = vpack.c.bf16 %v140_v13, %v136_v12  ;;  %v176_v13 = vld [vmem:[#allocation4 + $0x158] sm:$0xff] }
  0xc2   :  { %v234_v21 = vld [vmem:[#allocation4 + $0x328] sm:$0xff]  ;;  %v233_v31 = vld [vmem:[#allocation4 + $0x320] sm:$0xff]  ;;  %1855 = vmatpush1.bf16.msra.mxu1 %v1854_v27 }
  0xc3   :  { %v358_v23 = vld [vmem:[#allocation4 + $0x708] sm:$0xff]  ;;  %v1856_v29 = vpack.c.bf16 %v234_v21, %v230_v20  ;;  %v357_v32 = vld [vmem:[#allocation4 + $0x700] sm:$0xff]  ;;  %1917 = vmatprep.subr.bf16.mxu0 %v1916_v19  ;;  %v1858_v42 = vpack.c.bf16 %v233_v31, %v229_v30  ;;  %v135_v20 = vld [vmem:[#allocation4 + $0x10] sm:$0xff] }
  0xc4   :  { %v362_v24 = vld [vmem:[#allocation4 + $0x728] sm:$0xff]  ;;  %v361_v36 = vld [vmem:[#allocation4 + $0x720] sm:$0xff]  ;;  %1919 = vmatpush1.bf16.msra.mxu0 %v1918_v28  ;;  %v139_v21 = vld [vmem:[#allocation4 + $0x30] sm:$0xff] }
  0xc5   :  { %v1920_v35 = vpack.c.bf16 %v362_v24, %v358_v23  ;;  %v238_v37 = vld [vmem:[#allocation4 + $0x348] sm:$0xff]  ;;  %1857 = vmatprep.subr.bf16.mxu1 %v1856_v29  ;;  %v1922_v43 = vpack.c.bf16 %v361_v36, %v357_v32  ;;  %v237_v45 = vld [vmem:[#allocation4 + $0x340] sm:$0xff]  ;;  %v144_v24 = vld [vmem:[#allocation4 + $0x58] sm:$0xff]  ;;  %v2066_v29 = vpack.c.bf16 %v139_v21, %v135_v20 }
  0xc6   :  { %v242_v38 = vld [vmem:[#allocation4 + $0x368] sm:$0xff]  ;;  %v241_v46 = vld [vmem:[#allocation4 + $0x360] sm:$0xff]  ;;  %1859 = vmatpush1.bf16.msra.mxu1 %v1858_v42  ;;  %v2068_v31 = vpack.c.bf16 %v148_v26, %v144_v24  ;;  %v147_v36 = vld [vmem:[#allocation4 + $0x70] sm:$0xff] }
  0xc7   :  { %v366_v39 = vld [vmem:[#allocation4 + $0x748] sm:$0xff]  ;;  %v1860_v44 = vpack.c.bf16 %v242_v38, %v238_v37  ;;  %v365_v47 = vld [vmem:[#allocation4 + $0x740] sm:$0xff]  ;;  %1921 = vmatprep.subr.bf16.mxu0 %v1920_v35  ;;  %v1862_v54 = vpack.c.bf16 %v241_v46, %v237_v45  ;;  %v143_v35 = vld [vmem:[#allocation4 + $0x50] sm:$0xff] }
  0xc8   :  { %v370_v40 = vld [vmem:[#allocation4 + $0x768] sm:$0xff]  ;;  %v369_v49 = vld [vmem:[#allocation4 + $0x760] sm:$0xff]  ;;  %1923 = vmatpush1.bf16.msra.mxu0 %v1922_v43  ;;  %v175_v21 = vld [vmem:[#allocation4 + $0x150] sm:$0xff] }
  0xc9   :  { %v1924_v48 = vpack.c.bf16 %v370_v40, %v366_v39  ;;  %v246_v50 = vld [vmem:[#allocation4 + $0x388] sm:$0xff]  ;;  %1861 = vmatprep.subr.bf16.mxu1 %v1860_v44  ;;  %v1926_v55 = vpack.c.bf16 %v369_v49, %v365_v47  ;;  %v245_v57 = vld [vmem:[#allocation4 + $0x380] sm:$0xff]  ;;  %v152_v39 = vld [vmem:[#allocation4 + $0x98] sm:$0xff]  ;;  %v2070_v44 = vpack.c.bf16 %v147_v36, %v143_v35 }
  0xca   :  { %v250_v51 = vld [vmem:[#allocation4 + $0x3a8] sm:$0xff]  ;;  %v249_v58 = vld [vmem:[#allocation4 + $0x3a0] sm:$0xff]  ;;  %1863 = vmatpush1.bf16.msra.mxu1 %v1862_v54  ;;  %v156_v40 = vld [vmem:[#allocation4 + $0xb8] sm:$0xff] }
  0xcb   :  { %v374_v52 = vld [vmem:[#allocation4 + $0x788] sm:$0xff]  ;;  %v1864_v56 = vpack.c.bf16 %v250_v51, %v246_v50  ;;  %v373_v59 = vld [vmem:[#allocation4 + $0x780] sm:$0xff]  ;;  %1925 = vmatprep.subr.bf16.mxu0 %v1924_v48  ;;  %v1866_v3 = vpack.c.bf16 %v249_v58, %v245_v57  ;;  %v2072_v46 = vpack.c.bf16 %v156_v40, %v152_v39  ;;  %v151_v48 = vld [vmem:[#allocation4 + $0x90] sm:$0xff] }
  0xcc   :  { %v378_v53 = vld [vmem:[#allocation4 + $0x7a8] sm:$0xff]  ;;  %v377_v62 = vld [vmem:[#allocation4 + $0x7a0] sm:$0xff]  ;;  %1927 = vmatpush1.bf16.msra.mxu0 %v1926_v55  ;;  %v155_v49 = vld [vmem:[#allocation4 + $0xb0] sm:$0xff] }
  0xcd   :  { %v1928_v60 = vpack.c.bf16 %v378_v53, %v374_v52  ;;  %v254_v63 = vld [vmem:[#allocation4 + $0x3c8] sm:$0xff]  ;;  %1865 = vmatprep.subr.bf16.mxu1 %v1864_v56  ;;  %v1930_v4 = vpack.c.bf16 %v377_v62, %v373_v59  ;;  %v253_v6 = vld [vmem:[#allocation4 + $0x3c0] sm:$0xff]  ;;  %v160_v52 = vld [vmem:[#allocation4 + $0xd8] sm:$0xff]  ;;  %v2074_v56 = vpack.c.bf16 %v155_v49, %v151_v48 }
  0xce   :  { %v258_v0 = vld [vmem:[#allocation4 + $0x3e8] sm:$0xff]  ;;  %v257_v7 = vld [vmem:[#allocation4 + $0x3e0] sm:$0xff]  ;;  %1867 = vmatpush1.bf16.msra.mxu1 %v1866_v3  ;;  %v164_v53 = vld [vmem:[#allocation4 + $0xf8] sm:$0xff] }
  0xcf   :  { %v382_v1 = vld [vmem:[#allocation4 + $0x7c8] sm:$0xff]  ;;  %v1868_v5 = vpack.c.bf16 %v258_v0, %v254_v63  ;;  %v381_v8 = vld [vmem:[#allocation4 + $0x7c0] sm:$0xff]  ;;  %1929 = vmatprep.subr.bf16.mxu0 %v1928_v60  ;;  %v1870_v16 = vpack.c.bf16 %v257_v7, %v253_v6  ;;  %v2076_v58 = vpack.c.bf16 %v164_v53, %v160_v52  ;;  %v159_v60 = vld [vmem:[#allocation4 + $0xd0] sm:$0xff] }
  0xd0   :  { %v386_v2 = vld [vmem:[#allocation4 + $0x7e8] sm:$0xff]  ;;  %v385_v10 = vld [vmem:[#allocation4 + $0x7e0] sm:$0xff]  ;;  %1931 = vmatpush1.bf16.msra.mxu0 %v1930_v4  ;;  %v163_v62 = vld [vmem:[#allocation4 + $0xf0] sm:$0xff] }
  0xd1   :  { %v1932_v9 = vpack.c.bf16 %v386_v2, %v382_v1  ;;  %v390_v14 = vld [vmem:[#allocation4 + $0x808] sm:$0xff]  ;;  %1869 = vmatprep.subr.bf16.mxu1 %v1868_v5  ;;  %v1934_v17 = vpack.c.bf16 %v385_v10, %v381_v8  ;;  %v389_v19 = vld [vmem:[#allocation4 + $0x800] sm:$0xff]  ;;  %v168_v1 = vld [vmem:[#allocation4 + $0x118] sm:$0xff] }
  0xd2   :  { %v394_v15 = vld [vmem:[#allocation4 + $0x828] sm:$0xff]  ;;  %v393_v23 = vld [vmem:[#allocation4 + $0x820] sm:$0xff]  ;;  %1871 = vmatpush1.bf16.msra.mxu1 %v1870_v16  ;;  %v172_v2 = vld [vmem:[#allocation4 + $0x138] sm:$0xff] }
  0xd3   :  { %1933 = vmatprep.subr.bf16.mxu0 %v1932_v9  ;;  %v1936_v22 = vpack.c.bf16 %v394_v15, %v390_v14  ;;  %v398_v27 = vld [vmem:[#allocation4 + $0x848] sm:$0xff]  ;;  %2065 = vmatprep.subr.bf16.mxu1 %v2064_v18  ;;  %v1938_v30 = vpack.c.bf16 %v393_v23, %v389_v19  ;;  %v397_v32 = vld [vmem:[#allocation4 + $0x840] sm:$0xff]  ;;  %v2080_v6 = vpack.c.bf16 %v172_v2, %v168_v1  ;;  %v167_v8 = vld [vmem:[#allocation4 + $0x110] sm:$0xff] }
  0xd4   :  { %v402_v28 = vld [vmem:[#allocation4 + $0x868] sm:$0xff]  ;;  %1935 = vmatpush1.bf16.msra.mxu0 %v1934_v17  ;;  %v401_v38 = vld [vmem:[#allocation4 + $0x860] sm:$0xff]  ;;  %v171_v9 = vld [vmem:[#allocation4 + $0x130] sm:$0xff] }
  0xd5   :  { %1937 = vmatprep.subr.bf16.mxu0 %v1936_v22  ;;  %v1940_v37 = vpack.c.bf16 %v402_v28, %v398_v27  ;;  %776 = vmatmul.mubr.f32.vlgmr.msra.gmra.mrb[0].mxu1 %v2877_v25  ;;  %v406_v42 = vld [vmem:[#allocation4 + $0x888] sm:$0xff]  ;;  %v1942_v45 = vpack.c.bf16 %v401_v38, %v397_v32  ;;  %v405_v47 = vld [vmem:[#allocation4 + $0x880] sm:$0xff]  ;;  %v180_v14 = vld [vmem:[#allocation4 + $0x178] sm:$0xff]  ;;  %v2082_v17 = vpack.c.bf16 %v171_v9, %v167_v8 }
  0xd6   :  { %v410_v43 = vld [vmem:[#allocation4 + $0x8a8] sm:$0xff]  ;;  %2067 = vmatpush1.bf16.msra.mxu1 %v2066_v29  ;;  %v409_v51 = vld [vmem:[#allocation4 + $0x8a0] sm:$0xff]  ;;  %1059 = vmatprep.mubr.f32.mxu1 %v2881_v33  ;;  %v2078_v33 = vpack.c.bf16 %v163_v62, %v159_v60  ;;  %v2084_v19 = vpack.c.bf16 %v180_v14, %v176_v13  ;;  %v179_v22 = vld [vmem:[#allocation4 + $0x170] sm:$0xff] }
  0xd7   :  { %847 = vmatmul.mubr.f32.vlgmr.msra.gmra.mrb[0].mxu0 %v2884_v34  ;;  %2069 = vmatprep.subr.bf16.mxu1 %v2068_v31  ;;  %v1944_v50 = vpack.c.bf16 %v410_v43, %v406_v42  ;;  %v414_v54 = vld [vmem:[#allocation4 + $0x8c8] sm:$0xff]  ;;  %v1946_v57 = vpack.c.bf16 %v409_v51, %v405_v47  ;;  %v413_v59 = vld [vmem:[#allocation4 + $0x8c0] sm:$0xff]  ;;  %v184_v26 = vld [vmem:[#allocation4 + $0x198] sm:$0xff] }
  0xd8   :  { %1939 = vmatpush1.bf16.msra.mxu0 %v1938_v30  ;;  %v418_v55 = vld [vmem:[#allocation4 + $0x8e8] sm:$0xff]  ;;  %v417_v0 = vld [vmem:[#allocation4 + $0x8e0] sm:$0xff]  ;;  %v188_v27 = vld [vmem:[#allocation4 + $0x1b8] sm:$0xff]  ;;  %v2086_v30 = vpack.c.bf16 %v179_v22, %v175_v21 }
  0xd9   :  { %1941 = vmatprep.subr.bf16.mxu0 %v1940_v37  ;;  %v1948_v63 = vpack.c.bf16 %v418_v55, %v414_v54  ;;  %v422_v3 = vld [vmem:[#allocation4 + $0x908] sm:$0xff]  ;;  %v1950_v5 = vpack.c.bf16 %v417_v0, %v413_v59  ;;  %v421_v7 = vld [vmem:[#allocation4 + $0x900] sm:$0xff]  ;;  %v2088_v35 = vpack.c.bf16 %v188_v27, %v184_v26  ;;  %v183_v36 = vld [vmem:[#allocation4 + $0x190] sm:$0xff] }
  0xda   :  { %2071 = vmatpush1.bf16.msra.mxu1 %v2070_v44  ;;  %v426_v4 = vld [vmem:[#allocation4 + $0x928] sm:$0xff]  ;;  %v425_v12 = vld [vmem:[#allocation4 + $0x920] sm:$0xff]  ;;  %v187_v37 = vld [vmem:[#allocation4 + $0x1b0] sm:$0xff] }
  0xdb   :  { %2073 = vmatprep.subr.bf16.mxu1 %v2072_v46  ;;  %v1952_v10 = vpack.c.bf16 %v426_v4, %v422_v3  ;;  %v430_v15 = vld [vmem:[#allocation4 + $0x948] sm:$0xff]  ;;  %v1954_v18 = vpack.c.bf16 %v425_v12, %v421_v7  ;;  %v429_v20 = vld [vmem:[#allocation4 + $0x940] sm:$0xff]  ;;  %v2895_v38 = vld [vmem:[#allocation2 + $0x8] sm:$0xff]  ;;  %v2090_v47 = vpack.c.bf16 %v187_v37, %v183_v36 }
  0xdc   :  { %1943 = vmatpush1.bf16.msra.mxu0 %v1942_v45  ;;  %v434_v16 = vld [vmem:[#allocation4 + $0x968] sm:$0xff]  ;;  %v433_v24 = vld [vmem:[#allocation4 + $0x960] sm:$0xff]  ;;  %v192_v42 = vld [vmem:[#allocation4 + $0x1d8] sm:$0xff]  ;;  %v2899_v44 = vrot.slane %v2895_v38, %v2874_v11 }
  0xdd   :  { %1945 = vmatprep.subr.bf16.mxu0 %v1944_v50  ;;  %v1956_v23 = vpack.c.bf16 %v434_v16, %v430_v15  ;;  %v438_v28 = vld [vmem:[#allocation4 + $0x988] sm:$0xff]  ;;  %v437_v31 = vld [vmem:[#allocation4 + $0x980] sm:$0xff]  ;;  %v1958_v32 = vpack.c.bf16 %v433_v24, %v429_v20  ;;  %v196_v43 = vld [vmem:[#allocation4 + $0x1f8] sm:$0xff] }
  0xde   :  { %2075 = vmatpush1.bf16.msra.mxu1 %v2074_v56  ;;  %v442_v29 = vld [vmem:[#allocation4 + $0x9a8] sm:$0xff]  ;;  %v441_v40 = vld [vmem:[#allocation4 + $0x9a0] sm:$0xff]  ;;  %v2903_v48 = vcombine.high %v2899_v44, %v2899_v44  ;;  %v2092_v50 = vpack.c.bf16 %v196_v43, %v192_v42  ;;  %v191_v52 = vld [vmem:[#allocation4 + $0x1d0] sm:$0xff] }
  0xdf   :  { %2077 = vmatprep.subr.bf16.mxu1 %v2076_v58  ;;  %v1960_v39 = vpack.c.bf16 %v442_v29, %v438_v28  ;;  %v446_v45 = vld [vmem:[#allocation4 + $0x9c8] sm:$0xff]  ;;  %v1962_v49 = vpack.c.bf16 %v441_v40, %v437_v31  ;;  %v445_v51 = vld [vmem:[#allocation4 + $0x9c0] sm:$0xff]  ;;  %v195_v53 = vld [vmem:[#allocation4 + $0x1f0] sm:$0xff] }
  0xe0   :  { %1947 = vmatpush1.bf16.msra.mxu0 %v1946_v57  ;;  %v450_v46 = vld [vmem:[#allocation4 + $0x9e8] sm:$0xff]  ;;  %v449_v55 = vld [vmem:[#allocation4 + $0x9e0] sm:$0xff]  ;;  %v200_v56 = vld [vmem:[#allocation4 + $0x218] sm:$0xff]  ;;  %917 = vmatprep.mubr.f32.mxu0 %v2903_v48  ;;  %v2094_v60 = vpack.c.bf16 %v195_v53, %v191_v52 }
  0xe1   :  { %1949 = vmatprep.subr.bf16.mxu0 %v1948_v63  ;;  %v1964_v54 = vpack.c.bf16 %v450_v46, %v446_v45  ;;  %v204_v57 = vld [vmem:[#allocation4 + $0x238] sm:$0xff]  ;;  %v454_v58 = vld [vmem:[#allocation4 + $0xa08] sm:$0xff]  ;;  %v1966_v62 = vpack.c.bf16 %v449_v55, %v445_v51  ;;  %v453_v0 = vld [vmem:[#allocation4 + $0xa00] sm:$0xff] }
  0xe2   :  { %2079 = vmatpush1.bf16.msra.mxu1 %v2078_v33  ;;  %v458_v59 = vld [vmem:[#allocation4 + $0xa28] sm:$0xff]  ;;  %v2096_v63 = vpack.c.bf16 %v204_v57, %v200_v56  ;;  %v199_v1 = vld [vmem:[#allocation4 + $0x210] sm:$0xff]  ;;  %v457_v4 = vld [vmem:[#allocation4 + $0xa20] sm:$0xff] }
  0xe3   :  { %2081 = vmatprep.subr.bf16.mxu1 %v2080_v6  ;;  %v203_v2 = vld [vmem:[#allocation4 + $0x230] sm:$0xff]  ;;  %v1968_v3 = vpack.c.bf16 %v458_v59, %v454_v58  ;;  %v208_v33 = vld [vmem:[#allocation4 + $0x258] sm:$0xff]  ;;  %v462_v6 = vld [vmem:[#allocation4 + $0xa48] sm:$0xff]  ;;  %v1970_v9 = vpack.c.bf16 %v457_v4, %v453_v0 }
  0xe4   :  { %1951 = vmatpush1.bf16.msra.mxu0 %v1950_v5  ;;  %v212_v5 = vld [vmem:[#allocation4 + $0x278] sm:$0xff]  ;;  %v466_v7 = vld [vmem:[#allocation4 + $0xa68] sm:$0xff]  ;;  %v2098_v8 = vpack.c.bf16 %v203_v2, %v199_v1  ;;  %v461_v12 = vld [vmem:[#allocation4 + $0xa40] sm:$0xff] }
  0xe5   :  { %1953 = vmatprep.subr.bf16.mxu0 %v1952_v10  ;;  %v2100_v10 = vpack.c.bf16 %v212_v5, %v208_v33  ;;  %v207_v13 = vld [vmem:[#allocation4 + $0x250] sm:$0xff]  ;;  %v1972_v15 = vpack.c.bf16 %v466_v7, %v462_v6  ;;  %v465_v16 = vld [vmem:[#allocation4 + $0xa60] sm:$0xff]  ;;  %v474_v20 = vld [vmem:[#allocation4 + $0xaa8] sm:$0xff] }
  0xe6   :  { %2083 = vmatpush1.bf16.msra.mxu1 %v2082_v17  ;;  %v211_v14 = vld [vmem:[#allocation4 + $0x270] sm:$0xff]  ;;  %v216_v17 = vld [vmem:[#allocation4 + $0x298] sm:$0xff]  ;;  %v1974_v22 = vpack.c.bf16 %v465_v16, %v461_v12  ;;  %v469_v24 = vld [vmem:[#allocation4 + $0xa80] sm:$0xff] }
  0xe7   :  { %2085 = vmatprep.subr.bf16.mxu1 %v2084_v19  ;;  %v470_v19 = vld [vmem:[#allocation4 + $0xa88] sm:$0xff]  ;;  %v2102_v21 = vpack.c.bf16 %v211_v14, %v207_v13  ;;  %v215_v26 = vld [vmem:[#allocation4 + $0x290] sm:$0xff]  ;;  %v473_v29 = vld [vmem:[#allocation4 + $0xaa0] sm:$0xff] }
  0xe8   :  { %1955 = vmatpush1.bf16.msra.mxu0 %v1954_v18  ;;  %v220_v18 = vld [vmem:[#allocation4 + $0x2b8] sm:$0xff]  ;;  %v219_v27 = vld [vmem:[#allocation4 + $0x2b0] sm:$0xff]  ;;  %v1976_v28 = vpack.c.bf16 %v474_v20, %v470_v19  ;;  %v1978_v37 = vpack.c.bf16 %v473_v29, %v469_v24  ;;  %v477_v40 = vld [vmem:[#allocation4 + $0xac0] sm:$0xff] }
  0xe9   :  { %1957 = vmatprep.subr.bf16.mxu0 %v1956_v23  ;;  %v2104_v23 = vpack.c.bf16 %v220_v18, %v216_v17  ;;  %v228_v31 = vld [vmem:[#allocation4 + $0x2f8] sm:$0xff]  ;;  %v2106_v36 = vpack.c.bf16 %v219_v27, %v215_v26  ;;  %v223_v42 = vld [vmem:[#allocation4 + $0x2d0] sm:$0xff]  ;;  %v481_v46 = vld [vmem:[#allocation4 + $0xae0] sm:$0xff] }
  0xea   :  { %2087 = vmatpush1.bf16.msra.mxu1 %v2086_v30  ;;  %v224_v30 = vld [vmem:[#allocation4 + $0x2d8] sm:$0xff]  ;;  %v227_v43 = vld [vmem:[#allocation4 + $0x2f0] sm:$0xff]  ;;  %v490_v51 = vld [vmem:[#allocation4 + $0xb28] sm:$0xff]  ;;  %v1982_v53 = vpack.c.bf16 %v481_v46, %v477_v40 }
  0xeb   :  { %2089 = vmatprep.subr.bf16.mxu1 %v2088_v35  ;;  %v482_v35 = vld [vmem:[#allocation4 + $0xae8] sm:$0xff]  ;;  %v2110_v52 = vpack.c.bf16 %v227_v43, %v223_v42  ;;  %v485_v55 = vld [vmem:[#allocation4 + $0xb00] sm:$0xff]  ;;  %v231_v56 = vld [vmem:[#allocation4 + $0x310] sm:$0xff] }
  0xec   :  { %1959 = vmatpush1.bf16.msra.mxu0 %v1958_v32  ;;  %v478_v32 = vld [vmem:[#allocation4 + $0xac8] sm:$0xff]  ;;  %v235_v57 = vld [vmem:[#allocation4 + $0x330] sm:$0xff]  ;;  %v489_v59 = vld [vmem:[#allocation4 + $0xb20] sm:$0xff] }
  0xed   :  { %1961 = vmatprep.subr.bf16.mxu0 %v1960_v39  ;;  %v2108_v39 = vpack.c.bf16 %v228_v31, %v224_v30  ;;  %v1980_v45 = vpack.c.bf16 %v482_v35, %v478_v32  ;;  %v498_v0 = vld [vmem:[#allocation4 + $0xb68] sm:$0xff]  ;;  %v2114_v1 = vpack.c.bf16 %v235_v57, %v231_v56  ;;  %v1986_v2 = vpack.c.bf16 %v489_v59, %v485_v55  ;;  %v493_v4 = vld [vmem:[#allocation4 + $0xb40] sm:$0xff]  ;;  %v239_v33 = vld [vmem:[#allocation4 + $0x350] sm:$0xff] }
  0xee   :  { %2091 = vmatpush1.bf16.msra.mxu1 %v2090_v47  ;;  %v232_v47 = vld [vmem:[#allocation4 + $0x318] sm:$0xff]  ;;  %v243_v5 = vld [vmem:[#allocation4 + $0x370] sm:$0xff]  ;;  %v497_v7 = vld [vmem:[#allocation4 + $0xb60] sm:$0xff] }
  0xef   :  { %2093 = vmatprep.subr.bf16.mxu1 %v2092_v50  ;;  %v486_v50 = vld [vmem:[#allocation4 + $0xb08] sm:$0xff]  ;;  %v2118_v13 = vpack.c.bf16 %v243_v5, %v239_v33  ;;  %v1990_v14 = vpack.c.bf16 %v497_v7, %v493_v4  ;;  %v501_v16 = vld [vmem:[#allocation4 + $0xb80] sm:$0xff]  ;;  %v247_v17 = vld [vmem:[#allocation4 + $0x390] sm:$0xff] }
  0xf0   :  { %1963 = vmatpush1.bf16.msra.mxu0 %v1962_v49  ;;  %v236_v49 = vld [vmem:[#allocation4 + $0x338] sm:$0xff]  ;;  %v1984_v58 = vpack.c.bf16 %v490_v51, %v486_v50  ;;  %v506_v12 = vld [vmem:[#allocation4 + $0xba8] sm:$0xff]  ;;  %v251_v18 = vld [vmem:[#allocation4 + $0x3b0] sm:$0xff] }
  0xf1   :  { %1965 = vmatprep.subr.bf16.mxu0 %v1964_v54  ;;  %v2112_v54 = vpack.c.bf16 %v236_v49, %v232_v47  ;;  %v505_v20 = vld [vmem:[#allocation4 + $0xba0] sm:$0xff]  ;;  %v514_v24 = vld [vmem:[#allocation4 + $0xbe8] sm:$0xff]  ;;  %v2122_v26 = vpack.c.bf16 %v251_v18, %v247_v17  ;;  %v255_v30 = vld [vmem:[#allocation4 + $0x3d0] sm:$0xff] }
  0xf2   :  { %2095 = vmatpush1.bf16.msra.mxu1 %v2094_v60  ;;  %v240_v60 = vld [vmem:[#allocation4 + $0x358] sm:$0xff]  ;;  %v1994_v27 = vpack.c.bf16 %v505_v20, %v501_v16  ;;  %v509_v29 = vld [vmem:[#allocation4 + $0xbc0] sm:$0xff]  ;;  %v259_v31 = vld [vmem:[#allocation4 + $0x3f0] sm:$0xff] }
  0xf3   :  { %2097 = vmatprep.subr.bf16.mxu1 %v2096_v63  ;;  %v494_v63 = vld [vmem:[#allocation4 + $0xb48] sm:$0xff]  ;;  %v513_v35 = vld [vmem:[#allocation4 + $0xbe0] sm:$0xff]  ;;  %v2126_v43 = vpack.c.bf16 %v259_v31, %v255_v30  ;;  %v263_v49 = vld [vmem:[#allocation4 + $0x410] sm:$0xff] }
  0xf4   :  { %1967 = vmatpush1.bf16.msra.mxu0 %v1966_v62  ;;  %v244_v62 = vld [vmem:[#allocation4 + $0x378] sm:$0xff]  ;;  %v1988_v6 = vpack.c.bf16 %v498_v0, %v494_v63  ;;  %v518_v40 = vld [vmem:[#allocation4 + $0xc08] sm:$0xff]  ;;  %v517_v47 = vld [vmem:[#allocation4 + $0xc00] sm:$0xff] }
  0xf5   :  { %1969 = vmatprep.subr.bf16.mxu0 %v1968_v3  ;;  %v2116_v3 = vpack.c.bf16 %v244_v62, %v240_v60  ;;  %v522_v42 = vld [vmem:[#allocation4 + $0xc28] sm:$0xff]  ;;  %v267_v50 = vld [vmem:[#allocation4 + $0x430] sm:$0xff]  ;;  %v525_v60 = vld [vmem:[#allocation4 + $0xc40] sm:$0xff] }
  0xf6   :  { %2099 = vmatpush1.bf16.msra.mxu1 %v2098_v8  ;;  %v248_v8 = vld [vmem:[#allocation4 + $0x398] sm:$0xff]  ;;  %v2000_v51 = vpack.c.bf16 %v522_v42, %v518_v40  ;;  %v530_v56 = vld [vmem:[#allocation4 + $0xc68] sm:$0xff]  ;;  %v2130_v57 = vpack.c.bf16 %v267_v50, %v263_v49  ;;  %v271_v62 = vld [vmem:[#allocation4 + $0x450] sm:$0xff] }
  0xf7   :  { %2101 = vmatprep.subr.bf16.mxu1 %v2100_v10  ;;  %v502_v10 = vld [vmem:[#allocation4 + $0xb88] sm:$0xff]  ;;  %v275_v63 = vld [vmem:[#allocation4 + $0x470] sm:$0xff]  ;;  %v541_v20 = vld [vmem:[#allocation4 + $0xcc0] sm:$0xff] }
  0xf8   :  { %1971 = vmatpush1.bf16.msra.mxu0 %v1970_v9  ;;  %v252_v9 = vld [vmem:[#allocation4 + $0x3b8] sm:$0xff]  ;;  %v1992_v19 = vpack.c.bf16 %v506_v12, %v502_v10  ;;  %v534_v4 = vld [vmem:[#allocation4 + $0xc88] sm:$0xff]  ;;  %v2134_v5 = vpack.c.bf16 %v275_v63, %v271_v62  ;;  %v283_v10 = vld [vmem:[#allocation4 + $0x4b0] sm:$0xff] }
  0xf9   :  { %1973 = vmatprep.subr.bf16.mxu0 %v1972_v15  ;;  %v2120_v15 = vpack.c.bf16 %v252_v9, %v248_v8  ;;  %v538_v33 = vld [vmem:[#allocation4 + $0xca8] sm:$0xff]  ;;  %v533_v8 = vld [vmem:[#allocation4 + $0xc80] sm:$0xff]  ;;  %v279_v9 = vld [vmem:[#allocation4 + $0x490] sm:$0xff] }
  0xfa   :  { %2103 = vmatpush1.bf16.msra.mxu1 %v2102_v21  ;;  %v256_v21 = vld [vmem:[#allocation4 + $0x3d8] sm:$0xff]  ;;  %v2008_v12 = vpack.c.bf16 %v538_v33, %v534_v4  ;;  %v546_v16 = vld [vmem:[#allocation4 + $0xce8] sm:$0xff]  ;;  %v2138_v17 = vpack.c.bf16 %v283_v10, %v279_v9  ;;  %v557_v50 = vld [vmem:[#allocation4 + $0xd40] sm:$0xff] }
  0xfb   :  { %2105 = vmatprep.subr.bf16.mxu1 %v2104_v23  ;;  %v510_v23 = vld [vmem:[#allocation4 + $0xbc8] sm:$0xff]  ;;  %v304_v40 = vld [vmem:[#allocation4 + $0x558] sm:$0xff]  ;;  %v565_v63 = vld [vmem:[#allocation4 + $0xd80] sm:$0xff] }
  0xfc   :  { %1975 = vmatpush1.bf16.msra.mxu0 %v1974_v22  ;;  %v260_v22 = vld [vmem:[#allocation4 + $0x3f8] sm:$0xff]  ;;  %v1996_v32 = vpack.c.bf16 %v514_v24, %v510_v23  ;;  %v545_v24 = vld [vmem:[#allocation4 + $0xce0] sm:$0xff] }
  0xfd   :  { %1977 = vmatprep.subr.bf16.mxu0 %v1976_v28  ;;  %v2124_v28 = vpack.c.bf16 %v260_v22, %v256_v21  ;;  %v287_v21 = vld [vmem:[#allocation4 + $0x4d0] sm:$0xff]  ;;  %v308_v42 = vld [vmem:[#allocation4 + $0x578] sm:$0xff]  ;;  %v573_v10 = vld [vmem:[#allocation4 + $0xdc0] sm:$0xff] }
  0xfe   :  { %2107 = vmatpush1.bf16.msra.mxu1 %v2106_v36  ;;  %v264_v36 = vld [vmem:[#allocation4 + $0x418] sm:$0xff]  ;;  %v291_v22 = vld [vmem:[#allocation4 + $0x4f0] sm:$0xff]  ;;  %v2148_v49 = vpack.c.bf16 %v308_v42, %v304_v40  ;;  %v593_v42 = vld [vmem:[#allocation4 + $0xe60] sm:$0xff] }
  0xff   :  { %2109 = vmatprep.subr.bf16.mxu1 %v2108_v39  ;;  %v686_v39 = vcombine.high %v2895_v38, %v2895_v38  ;;  %v526_v38 = vld [vmem:[#allocation4 + $0xc48] sm:$0xff]  ;;  %v2142_v30 = vpack.c.bf16 %v291_v22, %v287_v21  ;;  %v320_v4 = vld [vmem:[#allocation4 + $0x5d8] sm:$0xff]  ;;  %v581_v22 = vld [vmem:[#allocation4 + $0xe00] sm:$0xff] }
 0x100   :  { %1979 = vmatpush1.bf16.msra.mxu0 %v1978_v37  ;;  %v268_v37 = vld [vmem:[#allocation4 + $0x438] sm:$0xff]  ;;  %v2004_v0 = vpack.c.bf16 %v530_v56, %v526_v38 }
 0x101   :  { %1981 = vmatprep.subr.bf16.mxu0 %v1980_v45  ;;  %v1998_v45 = vpack.c.bf16 %v513_v35, %v509_v29  ;;  %v2128_v46 = vpack.c.bf16 %v268_v37, %v264_v36  ;;  %v2909_v55 = vrot.slane %v686_v39, %v2874_v11  ;;  %v554_v29 = vld [vmem:[#allocation4 + $0xd28] sm:$0xff]  ;;  %v295_v35 = vld [vmem:[#allocation4 + $0x510] sm:$0xff]  ;;  %v553_v39 = vld [vmem:[#allocation4 + $0xd20] sm:$0xff] }
 0x102   :  { %2111 = vmatpush1.bf16.msra.mxu1 %v2110_v52  ;;  %v521_v52 = vld [vmem:[#allocation4 + $0xc20] sm:$0xff]  ;;  %v299_v36 = vld [vmem:[#allocation4 + $0x530] sm:$0xff]  ;;  %v312_v38 = vld [vmem:[#allocation4 + $0x598] sm:$0xff] }
 0x103   :  { %2113 = vmatprep.subr.bf16.mxu1 %v2112_v54  ;;  %v276_v54 = vld [vmem:[#allocation4 + $0x478] sm:$0xff]  ;;  %v2913_v11 = vcombine.high %v2909_v55, %v2909_v55 }
 0x104   :  { %1983 = vmatpush1.bf16.msra.mxu0 %v1982_v53  ;;  %v272_v53 = vld [vmem:[#allocation4 + $0x458] sm:$0xff] }
 0x105   :  { %1985 = vmatprep.subr.bf16.mxu0 %v1984_v58  ;;  %v2002_v58 = vpack.c.bf16 %v521_v52, %v517_v47  ;;  %v2132_v59 = vpack.c.bf16 %v276_v54, %v272_v53  ;;  %v307_v52 = vld [vmem:[#allocation4 + $0x570] sm:$0xff]  ;;  %v561_v54 = vld [vmem:[#allocation4 + $0xd60] sm:$0xff]  ;;  %v316_v56 = vld [vmem:[#allocation4 + $0x5b8] sm:$0xff] }
 0x106   :  { %2115 = vmatpush1.bf16.msra.mxu1 %v2114_v1  ;;  %v529_v1 = vld [vmem:[#allocation4 + $0xc60] sm:$0xff]  ;;  %v2152_v62 = vpack.c.bf16 %v316_v56, %v312_v38  ;;  %v324_v33 = vld [vmem:[#allocation4 + $0x5f8] sm:$0xff] }
 0x107   :  { %2117 = vmatprep.subr.bf16.mxu1 %v2116_v3  ;;  %v284_v3 = vld [vmem:[#allocation4 + $0x4b8] sm:$0xff]  ;;  %v2156_v9 = vpack.c.bf16 %v324_v33, %v320_v4  ;;  %v601_v56 = vld [vmem:[#allocation4 + $0xea0] sm:$0xff] }
 0x108   :  { %1987 = vmatpush1.bf16.msra.mxu0 %v1986_v2  ;;  %v280_v2 = vld [vmem:[#allocation4 + $0x498] sm:$0xff]  ;;  %v609_v33 = vld [vmem:[#allocation4 + $0xee0] sm:$0xff] }
 0x109   :  { %1989 = vmatprep.subr.bf16.mxu0 %v1988_v6  ;;  %v2006_v6 = vpack.c.bf16 %v529_v1, %v525_v60  ;;  %v2136_v7 = vpack.c.bf16 %v284_v3, %v280_v2  ;;  %v2022_v60 = vpack.c.bf16 %v561_v54, %v557_v50  ;;  %v315_v1 = vld [vmem:[#allocation4 + $0x5b0] sm:$0xff]  ;;  %v569_v3 = vld [vmem:[#allocation4 + $0xda0] sm:$0xff] }
 0x10a   :  { %2119 = vmatpush1.bf16.msra.mxu1 %v2118_v13  ;;  %v537_v13 = vld [vmem:[#allocation4 + $0xca0] sm:$0xff]  ;;  %v347_v54 = vld [vmem:[#allocation4 + $0x6b0] sm:$0xff] }
 0x10b   :  { %2121 = vmatprep.subr.bf16.mxu1 %v2120_v15  ;;  %v292_v15 = vld [vmem:[#allocation4 + $0x4f8] sm:$0xff]  ;;  %v2010_v18 = vpack.c.bf16 %v537_v13, %v533_v8  ;;  %v2026_v8 = vpack.c.bf16 %v569_v3, %v565_v63  ;;  %v323_v13 = vld [vmem:[#allocation4 + $0x5f0] sm:$0xff] }
 0x10c   :  { %1991 = vmatpush1.bf16.msra.mxu0 %v1990_v14  ;;  %v288_v14 = vld [vmem:[#allocation4 + $0x4d8] sm:$0xff]  ;;  %v355_v3 = vld [vmem:[#allocation4 + $0x6f0] sm:$0xff] }
 0x10d   :  { %1993 = vmatprep.subr.bf16.mxu0 %v1992_v19  ;;  %v2140_v19 = vpack.c.bf16 %v292_v15, %v288_v14  ;;  %v577_v15 = vld [vmem:[#allocation4 + $0xde0] sm:$0xff] }
 0x10e   :  { %2123 = vmatpush1.bf16.msra.mxu1 %v2122_v26  ;;  %v296_v26 = vld [vmem:[#allocation4 + $0x518] sm:$0xff] }
 0x10f   :  { %2125 = vmatprep.subr.bf16.mxu1 %v2124_v28  ;;  %v550_v28 = vld [vmem:[#allocation4 + $0xd08] sm:$0xff] }
 0x110   :  { %1995 = vmatpush1.bf16.msra.mxu0 %v1994_v27  ;;  %v300_v27 = vld [vmem:[#allocation4 + $0x538] sm:$0xff]  ;;  %v2016_v37 = vpack.c.bf16 %v554_v29, %v550_v28 }
 0x111   :  { %1997 = vmatprep.subr.bf16.mxu0 %v1996_v32  ;;  %v2144_v31 = vpack.c.bf16 %v300_v27, %v296_v26  ;;  %v549_v32 = vld [vmem:[#allocation4 + $0xd00] sm:$0xff]  ;;  %v336_v28 = vld [vmem:[#allocation4 + $0x658] sm:$0xff] }
 0x112   :  { %2127 = vmatpush1.bf16.msra.mxu1 %v2126_v43  ;;  %v558_v43 = vld [vmem:[#allocation4 + $0xd48] sm:$0xff]  ;;  %v2018_v47 = vpack.c.bf16 %v553_v39, %v549_v32  ;;  %v585_v27 = vld [vmem:[#allocation4 + $0xe20] sm:$0xff]  ;;  %v340_v29 = vld [vmem:[#allocation4 + $0x678] sm:$0xff] }
 0x113   :  { %2129 = vmatprep.subr.bf16.mxu1 %v2128_v46  ;;  %v2146_v46 = vpack.c.bf16 %v299_v36, %v295_v35  ;;  %v2034_v32 = vpack.c.bf16 %v585_v27, %v581_v22  ;;  %v2164_v35 = vpack.c.bf16 %v340_v29, %v336_v28  ;;  %v589_v36 = vld [vmem:[#allocation4 + $0xe40] sm:$0xff]  ;;  %v339_v39 = vld [vmem:[#allocation4 + $0x670] sm:$0xff] }
 0x114   :  { %1999 = vmatpush1.bf16.msra.mxu0 %v1998_v45  ;;  %v562_v45 = vld [vmem:[#allocation4 + $0xd68] sm:$0xff]  ;;  %v2038_v50 = vpack.c.bf16 %v593_v42, %v589_v36  ;;  %v371_v27 = vld [vmem:[#allocation4 + $0x770] sm:$0xff]  ;;  %v625_v29 = vld [vmem:[#allocation4 + $0xf60] sm:$0xff] }
 0x115   :  { %2001 = vmatprep.subr.bf16.mxu0 %v2000_v51  ;;  %1060 = vmatmul.mubr.f32.vlgmr.msra.gmra.mrb[2].mxu1 %v2877_v25  ;;  %v542_v25 = vld [vmem:[#allocation4 + $0xcc8] sm:$0xff]  ;;  %v303_v51 = vld [vmem:[#allocation4 + $0x550] sm:$0xff]  ;;  %v2020_v53 = vpack.c.bf16 %v562_v45, %v558_v43  ;;  %v344_v43 = vld [vmem:[#allocation4 + $0x698] sm:$0xff] }
 0x116   :  { %2131 = vmatpush1.bf16.msra.mxu1 %v2130_v57  ;;  %1130 = vmatprep.mubr.f32.mxu1 %v2889_v41  ;;  %v2012_v23 = vpack.c.bf16 %v546_v16, %v542_v25  ;;  %v2014_v41 = vpack.c.bf16 %v545_v24, %v541_v20  ;;  %v566_v57 = vld [vmem:[#allocation4 + $0xd88] sm:$0xff]  ;;  %v328_v25 = vld [vmem:[#allocation4 + $0x618] sm:$0xff]  ;;  %v2030_v20 = vpack.c.bf16 %v577_v15, %v573_v10  ;;  %v331_v24 = vld [vmem:[#allocation4 + $0x630] sm:$0xff] }
 0x117   :  { %918 = vmatmul.mubr.f32.vlgmr.msra.gmra.mrb[0].mxu0 %v2899_v44  ;;  %2133 = vmatprep.subr.bf16.mxu1 %v2132_v59  ;;  %v2150_v59 = vpack.c.bf16 %v307_v52, %v303_v51  ;;  %v332_v16 = vld [vmem:[#allocation4 + $0x638] sm:$0xff]  ;;  %v597_v52 = vld [vmem:[#allocation4 + $0xe80] sm:$0xff]  ;;  %v363_v15 = vld [vmem:[#allocation4 + $0x730] sm:$0xff] }
 0x118   :  { %2003 = vmatpush1.bf16.msra.mxu0 %v2002_v58  ;;  %988 = vmatprep.mubr.f32.mxu0 %v2913_v11  ;;  %v570_v58 = vld [vmem:[#allocation4 + $0xda8] sm:$0xff]  ;;  %v2160_v21 = vpack.c.bf16 %v332_v16, %v328_v25  ;;  %v348_v45 = vld [vmem:[#allocation4 + $0x6b8] sm:$0xff]  ;;  %v2042_v63 = vpack.c.bf16 %v601_v56, %v597_v52  ;;  %v617_v16 = vld [vmem:[#allocation4 + $0xf20] sm:$0xff] }
 0x119   :  { %2005 = vmatprep.subr.bf16.mxu0 %v2004_v0  ;;  %v311_v0 = vld [vmem:[#allocation4 + $0x590] sm:$0xff]  ;;  %v2024_v2 = vpack.c.bf16 %v570_v58, %v566_v57  ;;  %v2168_v51 = vpack.c.bf16 %v348_v45, %v344_v43  ;;  %v352_v57 = vld [vmem:[#allocation4 + $0x6d8] sm:$0xff]  ;;  %v633_v45 = vld [vmem:[#allocation4 + $0xfa0] sm:$0xff] }
 0x11a   :  { %2135 = vmatpush1.bf16.msra.mxu1 %v2134_v5  ;;  %v574_v5 = vld [vmem:[#allocation4 + $0xdc8] sm:$0xff]  ;;  %v356_v58 = vld [vmem:[#allocation4 + $0x6f8] sm:$0xff]  ;;  %v379_v42 = vld [vmem:[#allocation4 + $0x7b0] sm:$0xff] }
 0x11b   :  { %2137 = vmatprep.subr.bf16.mxu1 %v2136_v7  ;;  %v2154_v7 = vpack.c.bf16 %v315_v1, %v311_v0  ;;  %v2172_v0 = vpack.c.bf16 %v356_v58, %v352_v57  ;;  %v605_v1 = vld [vmem:[#allocation4 + $0xec0] sm:$0xff]  ;;  %v387_v56 = vld [vmem:[#allocation4 + $0x7f0] sm:$0xff] }
 0x11c   :  { %2007 = vmatpush1.bf16.msra.mxu0 %v2006_v6  ;;  %v578_v6 = vld [vmem:[#allocation4 + $0xde8] sm:$0xff]  ;;  %v2046_v10 = vpack.c.bf16 %v609_v33, %v605_v1  ;;  %v641_v58 = vld [vmem:[#allocation4 + $0xfe0] sm:$0xff]  ;;  %v391_v1 = vld [vmem:[#allocation4 + $0x810] sm:$0xff] }
 0x11d   :  { %2009 = vmatprep.subr.bf16.mxu0 %v2008_v12  ;;  %v319_v12 = vld [vmem:[#allocation4 + $0x5d0] sm:$0xff]  ;;  %v2028_v14 = vpack.c.bf16 %v578_v6, %v574_v5  ;;  %v360_v5 = vld [vmem:[#allocation4 + $0x718] sm:$0xff] }
 0x11e   :  { %2139 = vmatpush1.bf16.msra.mxu1 %v2138_v17  ;;  %v582_v17 = vld [vmem:[#allocation4 + $0xe08] sm:$0xff]  ;;  %v364_v6 = vld [vmem:[#allocation4 + $0x738] sm:$0xff] }
 0x11f   :  { %2141 = vmatprep.subr.bf16.mxu1 %v2140_v19  ;;  %v2158_v19 = vpack.c.bf16 %v323_v13, %v319_v12  ;;  %v2176_v12 = vpack.c.bf16 %v364_v6, %v360_v5  ;;  %v613_v13 = vld [vmem:[#allocation4 + $0xf00] sm:$0xff]  ;;  %v399_v6 = vld [vmem:[#allocation4 + $0x850] sm:$0xff] }
 0x120   :  { %2011 = vmatpush1.bf16.msra.mxu0 %v2010_v18  ;;  %v586_v18 = vld [vmem:[#allocation4 + $0xe28] sm:$0xff]  ;;  %v2050_v22 = vpack.c.bf16 %v617_v16, %v613_v13 }
 0x121   :  { %2013 = vmatprep.subr.bf16.mxu0 %v2012_v23  ;;  %v327_v23 = vld [vmem:[#allocation4 + $0x610] sm:$0xff]  ;;  %v2032_v26 = vpack.c.bf16 %v586_v18, %v582_v17  ;;  %v368_v17 = vld [vmem:[#allocation4 + $0x758] sm:$0xff] }
 0x122   :  { %2143 = vmatpush1.bf16.msra.mxu1 %v2142_v30  ;;  %v590_v30 = vld [vmem:[#allocation4 + $0xe48] sm:$0xff]  ;;  %v372_v18 = vld [vmem:[#allocation4 + $0x778] sm:$0xff] }
 0x123   :  { %2145 = vmatprep.subr.bf16.mxu1 %v2144_v31  ;;  %v2162_v31 = vpack.c.bf16 %v331_v24, %v327_v23  ;;  %v2180_v23 = vpack.c.bf16 %v372_v18, %v368_v17  ;;  %v621_v24 = vld [vmem:[#allocation4 + $0xf40] sm:$0xff]  ;;  %v1284_v13 = vld [vmem:[#allocation7 + $0x8] sm:$0xff]  ;;  %v1285_v17 = vld [vmem:[#allocation7 + $0x10] sm:$0xff] }
 0x124   :  { %2015 = vmatpush1.bf16.msra.mxu0 %v2014_v41  ;;  %v594_v41 = vld [vmem:[#allocation4 + $0xe68] sm:$0xff]  ;;  %v2054_v36 = vpack.c.bf16 %v625_v29, %v621_v24 }
 0x125   :  { %2017 = vmatprep.subr.bf16.mxu0 %v2016_v37  ;;  %v335_v37 = vld [vmem:[#allocation4 + $0x650] sm:$0xff]  ;;  %v2036_v40 = vpack.c.bf16 %v594_v41, %v590_v30  ;;  %v376_v30 = vld [vmem:[#allocation4 + $0x798] sm:$0xff] }
 0x126   :  { %2147 = vmatpush1.bf16.msra.mxu1 %v2146_v46  ;;  %v598_v46 = vld [vmem:[#allocation4 + $0xe88] sm:$0xff]  ;;  %v380_v41 = vld [vmem:[#allocation4 + $0x7b8] sm:$0xff] }
 0x127   :  { %2149 = vmatprep.subr.bf16.mxu1 %v2148_v49  ;;  %v2166_v49 = vpack.c.bf16 %v339_v39, %v335_v37  ;;  %v2184_v37 = vpack.c.bf16 %v380_v41, %v376_v30  ;;  %v629_v39 = vld [vmem:[#allocation4 + $0xf80] sm:$0xff]  ;;  %v1288_v18 = vld [vmem:[#allocation7 + $0x28] sm:$0xff] }
 0x128   :  { %2019 = vmatpush1.bf16.msra.mxu0 %v2018_v47  ;;  %v602_v47 = vld [vmem:[#allocation4 + $0xea8] sm:$0xff]  ;;  %v2058_v52 = vpack.c.bf16 %v633_v45, %v629_v39  ;;  %v415_v41 = vld [vmem:[#allocation4 + $0x8d0] sm:$0xff]  ;;  %v1298_v39 = vld [vmem:[#allocation7 + $0x78] sm:$0xff] }
 0x129   :  { %2021 = vmatprep.subr.bf16.mxu0 %v2020_v53  ;;  %v343_v53 = vld [vmem:[#allocation4 + $0x690] sm:$0xff]  ;;  %v2040_v38 = vpack.c.bf16 %v602_v47, %v598_v46  ;;  %v384_v46 = vld [vmem:[#allocation4 + $0x7d8] sm:$0xff] }
 0x12a   :  { %2151 = vmatpush1.bf16.msra.mxu1 %v2150_v59  ;;  %v606_v59 = vld [vmem:[#allocation4 + $0xec8] sm:$0xff]  ;;  %v388_v47 = vld [vmem:[#allocation4 + $0x7f8] sm:$0xff] }
 0x12b   :  { %2153 = vmatprep.subr.bf16.mxu1 %v2152_v62  ;;  %v2170_v62 = vpack.c.bf16 %v347_v54, %v343_v53  ;;  %v2188_v53 = vpack.c.bf16 %v388_v47, %v384_v46  ;;  %v637_v54 = vld [vmem:[#allocation4 + $0xfc0] sm:$0xff]  ;;  %v1292_v24 = vld [vmem:[#allocation7 + $0x48] sm:$0xff] }
 0x12c   :  { %2023 = vmatpush1.bf16.msra.mxu0 %v2022_v60  ;;  %v610_v60 = vld [vmem:[#allocation4 + $0xee8] sm:$0xff]  ;;  %v423_v46 = vld [vmem:[#allocation4 + $0x910] sm:$0xff] }
 0x12d   :  { %2025 = vmatprep.subr.bf16.mxu0 %v2024_v2  ;;  %v351_v2 = vld [vmem:[#allocation4 + $0x6d0] sm:$0xff]  ;;  %v2044_v4 = vpack.c.bf16 %v610_v60, %v606_v59  ;;  %v392_v59 = vld [vmem:[#allocation4 + $0x818] sm:$0xff] }
 0x12e   :  { %2155 = vmatpush1.bf16.msra.mxu1 %v2154_v7  ;;  %v614_v7 = vld [vmem:[#allocation4 + $0xf08] sm:$0xff]  ;;  %v396_v60 = vld [vmem:[#allocation4 + $0x838] sm:$0xff] }
 0x12f   :  { %2157 = vmatprep.subr.bf16.mxu1 %v2156_v9  ;;  %v2174_v9 = vpack.c.bf16 %v355_v3, %v351_v2  ;;  %v395_v2 = vld [vmem:[#allocation4 + $0x830] sm:$0xff]  ;;  %v400_v3 = vld [vmem:[#allocation4 + $0x858] sm:$0xff] }
 0x130   :  { %2027 = vmatpush1.bf16.msra.mxu0 %v2026_v8  ;;  %v618_v8 = vld [vmem:[#allocation4 + $0xf28] sm:$0xff]  ;;  %v2194_v33 = vpack.c.bf16 %v395_v2, %v391_v1  ;;  %v435_v1 = vld [vmem:[#allocation4 + $0x970] sm:$0xff] }
 0x131   :  { %2029 = vmatprep.subr.bf16.mxu0 %v2028_v14  ;;  %v359_v14 = vld [vmem:[#allocation4 + $0x710] sm:$0xff]  ;;  %v2048_v25 = vpack.c.bf16 %v618_v8, %v614_v7  ;;  %v408_v8 = vld [vmem:[#allocation4 + $0x898] sm:$0xff] }
 0x132   :  { %2159 = vmatpush1.bf16.msra.mxu1 %v2158_v19  ;;  %v622_v19 = vld [vmem:[#allocation4 + $0xf48] sm:$0xff]  ;;  %v403_v7 = vld [vmem:[#allocation4 + $0x870] sm:$0xff] }
 0x133   :  { %2161 = vmatprep.subr.bf16.mxu1 %v2160_v21  ;;  %v2178_v21 = vpack.c.bf16 %v363_v15, %v359_v14  ;;  %v1286_v14 = vld [vmem:[#allocation7 + $0x18] sm:$0xff]  ;;  %v1283_v15 = vld [vmem:[#allocation7] sm:$0xff]  ;;  %v1304_v2 = vld [vmem:[#allocation7 + $0xa8] sm:$0xff] }
 0x134   :  { %2031 = vmatpush1.bf16.msra.mxu0 %v2030_v20  ;;  %v626_v20 = vld [vmem:[#allocation4 + $0xf68] sm:$0xff]  ;;  %v2320_v16 = vpack.c.bf16 %v1286_v14, %v1284_v13  ;;  %v443_v13 = vld [vmem:[#allocation4 + $0x9b0] sm:$0xff] }
 0x135   :  { %2033 = vmatprep.subr.bf16.mxu0 %v2032_v26  ;;  %v367_v26 = vld [vmem:[#allocation4 + $0x750] sm:$0xff]  ;;  %v2052_v28 = vpack.c.bf16 %v626_v20, %v622_v19  ;;  %v1290_v19 = vld [vmem:[#allocation7 + $0x38] sm:$0xff] }
 0x136   :  { %2163 = vmatpush1.bf16.msra.mxu1 %v2162_v31  ;;  %v630_v31 = vld [vmem:[#allocation4 + $0xf88] sm:$0xff] }
 0x137   :  { %2165 = vmatprep.subr.bf16.mxu1 %v2164_v35  ;;  %v2182_v35 = vpack.c.bf16 %v371_v27, %v367_v26  ;;  %v416_v26 = vld [vmem:[#allocation4 + $0x8d8] sm:$0xff]  ;;  %v1308_v14 = vld [vmem:[#allocation7 + $0xc8] sm:$0xff] }
 0x138   :  { %2035 = vmatpush1.bf16.msra.mxu0 %v2034_v32  ;;  %v634_v32 = vld [vmem:[#allocation4 + $0xfa8] sm:$0xff]  ;;  %v420_v27 = vld [vmem:[#allocation4 + $0x8f8] sm:$0xff] }
 0x139   :  { %2037 = vmatprep.subr.bf16.mxu0 %v2036_v40  ;;  %v375_v40 = vld [vmem:[#allocation4 + $0x790] sm:$0xff]  ;;  %v2056_v43 = vpack.c.bf16 %v634_v32, %v630_v31  ;;  %v1291_v32 = vld [vmem:[#allocation7 + $0x40] sm:$0xff] }
 0x13a   :  { %2167 = vmatpush1.bf16.msra.mxu1 %v2166_v49  ;;  %v638_v49 = vld [vmem:[#allocation4 + $0xfc8] sm:$0xff] }
 0x13b   :  { %2169 = vmatprep.subr.bf16.mxu1 %v2168_v51  ;;  %v2186_v51 = vpack.c.bf16 %v379_v42, %v375_v40  ;;  %v424_v40 = vld [vmem:[#allocation4 + $0x918] sm:$0xff] }
 0x13c   :  { %2039 = vmatpush1.bf16.msra.mxu0 %v2038_v50  ;;  %v642_v50 = vld [vmem:[#allocation4 + $0xfe8] sm:$0xff]  ;;  %v428_v42 = vld [vmem:[#allocation4 + $0x938] sm:$0xff] }
 0x13d   :  { %2041 = vmatprep.subr.bf16.mxu0 %v2040_v38  ;;  %v383_v38 = vld [vmem:[#allocation4 + $0x7d0] sm:$0xff]  ;;  %v2060_v57 = vpack.c.bf16 %v642_v50, %v638_v49  ;;  %v1295_v49 = vld [vmem:[#allocation7 + $0x60] sm:$0xff] }
 0x13e   :  { %2171 = vmatpush1.bf16.msra.mxu1 %v2170_v62  ;;  %v2190_v62 = vpack.c.bf16 %v387_v56, %v383_v38  ;;  %v1297_v50 = vld [vmem:[#allocation7 + $0x70] sm:$0xff] }
 0x13f   :  { %2173 = vmatprep.subr.bf16.mxu1 %v2172_v0  ;;  %v2192_v0 = vpack.c.bf16 %v396_v60, %v392_v59  ;;  %v432_v38 = vld [vmem:[#allocation4 + $0x958] sm:$0xff]  ;;  %v431_v59 = vld [vmem:[#allocation4 + $0x950] sm:$0xff] }
 0x140   :  { %2043 = vmatpush1.bf16.msra.mxu0 %v2042_v63  ;;  %v2062_v63 = vpack.c.bf16 %v641_v58, %v637_v54  ;;  %v1302_v54 = vld [vmem:[#allocation7 + $0x98] sm:$0xff] }
 0x141   :  { %2045 = vmatprep.subr.bf16.mxu0 %v2044_v4  ;;  %v404_v4 = vld [vmem:[#allocation4 + $0x878] sm:$0xff] }
 0x142   :  { %2175 = vmatpush1.bf16.msra.mxu1 %v2174_v9  ;;  %v2196_v5 = vpack.c.bf16 %v404_v4, %v400_v3  ;;  %v412_v9 = vld [vmem:[#allocation4 + $0x8b8] sm:$0xff] }
 0x143   :  { %2177 = vmatprep.subr.bf16.mxu1 %v2176_v12  ;;  %v411_v12 = vld [vmem:[#allocation4 + $0x8b0] sm:$0xff]  ;;  %v2200_v20 = vpack.c.bf16 %v412_v9, %v408_v8  ;;  %v436_v56 = vld [vmem:[#allocation4 + $0x978] sm:$0xff]  ;;  %v1303_v9 = vld [vmem:[#allocation7 + $0xa0] sm:$0xff] }
 0x144   :  { %2047 = vmatpush1.bf16.msra.mxu0 %v2046_v10  ;;  %v407_v10 = vld [vmem:[#allocation4 + $0x890] sm:$0xff]  ;;  %v1306_v3 = vld [vmem:[#allocation7 + $0xb8] sm:$0xff] }
 0x145   :  { %2049 = vmatprep.subr.bf16.mxu0 %v2048_v25  ;;  %v2198_v25 = vpack.c.bf16 %v403_v7, %v399_v6  ;;  %v2202_v30 = vpack.c.bf16 %v411_v12, %v407_v10  ;;  %v440_v4 = vld [vmem:[#allocation4 + $0x998] sm:$0xff]  ;;  %v2214_v6 = vpack.c.bf16 %v435_v1, %v431_v59  ;;  %v439_v7 = vld [vmem:[#allocation4 + $0x990] sm:$0xff]  ;;  %v2340_v8 = vpack.c.bf16 %v1306_v3, %v1304_v2 }
 0x146   :  { %2179 = vmatpush1.bf16.msra.mxu1 %v2178_v21  ;;  %v2322_v21 = vpack.c.bf16 %v1285_v17, %v1283_v15  ;;  %v1305_v10 = vld [vmem:[#allocation7 + $0xb0] sm:$0xff]  ;;  %v1310_v15 = vld [vmem:[#allocation7 + $0xd8] sm:$0xff]  ;;  %v1324_v2 = vld [vmem:[#allocation7 + $0x148] sm:$0xff] }
 0x147   :  { %2181 = vmatprep.subr.bf16.mxu1 %v2180_v23  ;;  %v1289_v23 = vld [vmem:[#allocation7 + $0x30] sm:$0xff]  ;;  %v2342_v17 = vpack.c.bf16 %v1305_v10, %v1303_v9  ;;  %v1326_v3 = vld [vmem:[#allocation7 + $0x158] sm:$0xff]  ;;  %v1323_v9 = vld [vmem:[#allocation7 + $0x140] sm:$0xff] }
 0x148   :  { %2051 = vmatpush1.bf16.msra.mxu0 %v2050_v22  ;;  %v2324_v22 = vpack.c.bf16 %v1290_v19, %v1288_v18  ;;  %v2218_v18 = vpack.c.bf16 %v443_v13, %v439_v7  ;;  %v447_v19 = vld [vmem:[#allocation4 + $0x9d0] sm:$0xff] }
 0x149   :  { %2053 = vmatprep.subr.bf16.mxu0 %v2052_v28  ;;  %v1294_v28 = vld [vmem:[#allocation7 + $0x58] sm:$0xff]  ;;  %v471_v59 = vld [vmem:[#allocation4 + $0xa90] sm:$0xff] }
 0x14a   :  { %2183 = vmatpush1.bf16.msra.mxu1 %v2182_v35  ;;  %v2328_v31 = vpack.c.bf16 %v1294_v28, %v1292_v24  ;;  %v1293_v35 = vld [vmem:[#allocation7 + $0x50] sm:$0xff]  ;;  %v1312_v24 = vld [vmem:[#allocation7 + $0xe8] sm:$0xff] }
 0x14b   :  { %2185 = vmatprep.subr.bf16.mxu1 %v2184_v37  ;;  %v1296_v37 = vld [vmem:[#allocation7 + $0x68] sm:$0xff]  ;;  %v460_v28 = vld [vmem:[#allocation4 + $0xa38] sm:$0xff] }
 0x14c   :  { %2055 = vmatpush1.bf16.msra.mxu0 %v2054_v36  ;;  %v419_v36 = vld [vmem:[#allocation4 + $0x8f0] sm:$0xff]  ;;  %v2332_v47 = vpack.c.bf16 %v1298_v39, %v1296_v37  ;;  %v1318_v39 = vld [vmem:[#allocation7 + $0x118] sm:$0xff] }
 0x14d   :  { %2057 = vmatprep.subr.bf16.mxu0 %v2056_v43  ;;  %v2330_v43 = vpack.c.bf16 %v1293_v35, %v1291_v32  ;;  %v2206_v45 = vpack.c.bf16 %v419_v36, %v415_v41  ;;  %v455_v41 = vld [vmem:[#allocation4 + $0xa10] sm:$0xff]  ;;  %v1311_v32 = vld [vmem:[#allocation7 + $0xe0] sm:$0xff] }
 0x14e   :  { %2187 = vmatpush1.bf16.msra.mxu1 %v2186_v51  ;;  %v2208_v51 = vpack.c.bf16 %v428_v42, %v424_v40  ;;  %v1313_v35 = vld [vmem:[#allocation7 + $0xf0] sm:$0xff]  ;;  %v1316_v37 = vld [vmem:[#allocation7 + $0x108] sm:$0xff] }
 0x14f   :  { %2189 = vmatprep.subr.bf16.mxu1 %v2188_v53  ;;  %v1300_v53 = vld [vmem:[#allocation7 + $0x88] sm:$0xff]  ;;  %v464_v40 = vld [vmem:[#allocation4 + $0xa58] sm:$0xff] }
 0x150   :  { %2059 = vmatpush1.bf16.msra.mxu0 %v2058_v52  ;;  %v427_v52 = vld [vmem:[#allocation4 + $0x930] sm:$0xff]  ;;  %v2336_v60 = vpack.c.bf16 %v1302_v54, %v1300_v53  ;;  %v468_v42 = vld [vmem:[#allocation4 + $0xa78] sm:$0xff] }
 0x151   :  { %2061 = vmatprep.subr.bf16.mxu0 %v2060_v57  ;;  %v2334_v57 = vpack.c.bf16 %v1297_v50, %v1295_v49  ;;  %v2210_v58 = vpack.c.bf16 %v427_v52, %v423_v46  ;;  %v459_v36 = vld [vmem:[#allocation4 + $0xa30] sm:$0xff]  ;;  %v1315_v49 = vld [vmem:[#allocation7 + $0x100] sm:$0xff]  ;;  %v1322_v54 = vld [vmem:[#allocation7 + $0x138] sm:$0xff] }
 0x152   :  { %2191 = vmatpush1.bf16.msra.mxu1 %v2190_v62  ;;  %v1299_v62 = vld [vmem:[#allocation7 + $0x80] sm:$0xff]  ;;  %v463_v46 = vld [vmem:[#allocation4 + $0xa50] sm:$0xff] }
 0x153   :  { %2193 = vmatprep.subr.bf16.mxu1 %v2192_v0  ;;  %v2212_v0 = vpack.c.bf16 %v436_v56, %v432_v38  ;;  %v1317_v50 = vld [vmem:[#allocation7 + $0x110] sm:$0xff]  ;;  %v1320_v53 = vld [vmem:[#allocation7 + $0x128] sm:$0xff] }
 0x154   :  { %2063 = vmatpush1.bf16.msra.mxu0 %v2062_v63  ;;  %v1301_v63 = vld [vmem:[#allocation7 + $0x90] sm:$0xff] }
 0x155   :  { %1131 = vmatmul.mubr.f32.vlgmr.msra.gmra.mrb[2].mxu1 %v2884_v34  ;;  %v1287_v34 = vld [vmem:[#allocation7 + $0x20] sm:$0xff]  ;;  %2321 = vmatprep.subr.bf16.mxu0 %v2320_v16  ;;  %v452_v16 = vld [vmem:[#allocation4 + $0x9f8] sm:$0xff]  ;;  %v467_v52 = vld [vmem:[#allocation4 + $0xa70] sm:$0xff] }
 0x156   :  { %2195 = vmatpush1.bf16.msra.mxu1 %v2194_v33  ;;  %1201 = vmatprep.mubr.f32.mxu1 %v2903_v48  ;;  %v2326_v29 = vpack.c.bf16 %v1289_v23, %v1287_v34  ;;  %v2204_v48 = vpack.c.bf16 %v420_v27, %v416_v26  ;;  %v444_v33 = vld [vmem:[#allocation4 + $0x9b8] sm:$0xff]  ;;  %v451_v23 = vld [vmem:[#allocation4 + $0x9f0] sm:$0xff] }
 0x157   :  { %989 = vmatmul.mubr.f32.vlgmr.msra.gmra.mrb[0].mxu0 %v2909_v55  ;;  %2197 = vmatprep.subr.bf16.mxu1 %v2196_v5  ;;  %v2338_v5 = vpack.c.bf16 %v1301_v63, %v1299_v62  ;;  %v2216_v12 = vpack.c.bf16 %v444_v33, %v440_v4  ;;  %v1314_v26 = vld [vmem:[#allocation7 + $0xf8] sm:$0xff]  ;;  %v1319_v62 = vld [vmem:[#allocation7 + $0x120] sm:$0xff]  ;;  %v1321_v63 = vld [vmem:[#allocation7 + $0x130] sm:$0xff] }
 0x158   :  { %2323 = vmatpush1.bf16.msra.mxu0 %v2322_v21  ;;  %v1307_v21 = vld [vmem:[#allocation7 + $0xc0] sm:$0xff]  ;;  %v456_v27 = vld [vmem:[#allocation4 + $0xa18] sm:$0xff]  ;;  %v475_v1 = vld [vmem:[#allocation4 + $0xab0] sm:$0xff] }
 0x159   :  { %2325 = vmatprep.subr.bf16.mxu0 %v2324_v22  ;;  %v1309_v22 = vld [vmem:[#allocation7 + $0xd0] sm:$0xff] }
 0x15a   :  { %2199 = vmatpush1.bf16.msra.mxu1 %v2198_v25  ;;  %v448_v25 = vld [vmem:[#allocation4 + $0x9d8] sm:$0xff]  ;;  %v479_v7 = vld [vmem:[#allocation4 + $0xad0] sm:$0xff] }
 0x15b   :  { %2201 = vmatprep.subr.bf16.mxu1 %v2200_v20  ;;  %v2344_v20 = vpack.c.bf16 %v1310_v15, %v1308_v14  ;;  %v2220_v34 = vpack.c.bf16 %v452_v16, %v448_v25  ;;  %v472_v38 = vld [vmem:[#allocation4 + $0xa98] sm:$0xff]  ;;  %v483_v13 = vld [vmem:[#allocation4 + $0xaf0] sm:$0xff] }
 0x15c   :  { %2327 = vmatpush1.bf16.msra.mxu0 %v2326_v29  ;;  %v2346_v29 = vpack.c.bf16 %v1309_v22, %v1307_v21  ;;  %v476_v56 = vld [vmem:[#allocation4 + $0xab8] sm:$0xff]  ;;  %v1328_v14 = vld [vmem:[#allocation7 + $0x168] sm:$0xff]  ;;  %v1327_v21 = vld [vmem:[#allocation7 + $0x160] sm:$0xff] }
 0x15d   :  { %2329 = vmatprep.subr.bf16.mxu0 %v2328_v31  ;;  %v2348_v31 = vpack.c.bf16 %v1314_v26, %v1312_v24  ;;  %v480_v4 = vld [vmem:[#allocation4 + $0xad8] sm:$0xff]  ;;  %v1332_v24 = vld [vmem:[#allocation7 + $0x188] sm:$0xff] }
 0x15e   :  { %2203 = vmatpush1.bf16.msra.mxu1 %v2202_v30  ;;  %v2222_v30 = vpack.c.bf16 %v451_v23, %v447_v19  ;;  %v484_v33 = vld [vmem:[#allocation4 + $0xaf8] sm:$0xff]  ;;  %v487_v19 = vld [vmem:[#allocation4 + $0xb10] sm:$0xff] }
 0x15f   :  { %2205 = vmatprep.subr.bf16.mxu1 %v2204_v48  ;;  %v2224_v48 = vpack.c.bf16 %v460_v28, %v456_v27  ;;  %v1325_v10 = vld [vmem:[#allocation7 + $0x150] sm:$0xff]  ;;  %v1330_v15 = vld [vmem:[#allocation7 + $0x178] sm:$0xff] }
 0x160   :  { %2331 = vmatpush1.bf16.msra.mxu0 %v2330_v43  ;;  %v2350_v43 = vpack.c.bf16 %v1313_v35, %v1311_v32  ;;  %v488_v25 = vld [vmem:[#allocation4 + $0xb18] sm:$0xff]  ;;  %v491_v23 = vld [vmem:[#allocation4 + $0xb30] sm:$0xff]  ;;  %v1331_v32 = vld [vmem:[#allocation7 + $0x180] sm:$0xff] }
 0x161   :  { %2333 = vmatprep.subr.bf16.mxu0 %v2332_v47  ;;  %v2352_v47 = vpack.c.bf16 %v1318_v39, %v1316_v37  ;;  %v492_v16 = vld [vmem:[#allocation4 + $0xb38] sm:$0xff]  ;;  %v1336_v37 = vld [vmem:[#allocation7 + $0x1a8] sm:$0xff] }
 0x162   :  { %2207 = vmatpush1.bf16.msra.mxu1 %v2206_v45  ;;  %v2226_v45 = vpack.c.bf16 %v459_v36, %v455_v41  ;;  %v1329_v22 = vld [vmem:[#allocation7 + $0x170] sm:$0xff]  ;;  %v1334_v26 = vld [vmem:[#allocation7 + $0x198] sm:$0xff] }
 0x163   :  { %2209 = vmatprep.subr.bf16.mxu1 %v2208_v51  ;;  %v2228_v51 = vpack.c.bf16 %v468_v42, %v464_v40  ;;  %v496_v27 = vld [vmem:[#allocation4 + $0xb58] sm:$0xff]  ;;  %v495_v41 = vld [vmem:[#allocation4 + $0xb50] sm:$0xff] }
 0x164   :  { %2335 = vmatpush1.bf16.msra.mxu0 %v2334_v57  ;;  %v2354_v57 = vpack.c.bf16 %v1317_v50, %v1315_v49  ;;  %v500_v28 = vld [vmem:[#allocation4 + $0xb78] sm:$0xff]  ;;  %v499_v36 = vld [vmem:[#allocation4 + $0xb70] sm:$0xff]  ;;  %v1335_v49 = vld [vmem:[#allocation7 + $0x1a0] sm:$0xff] }
 0x165   :  { %2337 = vmatprep.subr.bf16.mxu0 %v2336_v60  ;;  %v2356_v60 = vpack.c.bf16 %v1322_v54, %v1320_v53  ;;  %v1333_v35 = vld [vmem:[#allocation7 + $0x190] sm:$0xff]  ;;  %v1338_v39 = vld [vmem:[#allocation7 + $0x1b8] sm:$0xff]  ;;  %v1340_v53 = vld [vmem:[#allocation7 + $0x1c8] sm:$0xff] }
 0x166   :  { %2211 = vmatpush1.bf16.msra.mxu1 %v2210_v58  ;;  %v2230_v58 = vpack.c.bf16 %v467_v52, %v463_v46  ;;  %v504_v40 = vld [vmem:[#allocation4 + $0xb98] sm:$0xff]  ;;  %v503_v46 = vld [vmem:[#allocation4 + $0xb90] sm:$0xff] }
 0x167   :  { %2213 = vmatprep.subr.bf16.mxu1 %v2212_v0  ;;  %v2232_v0 = vpack.c.bf16 %v476_v56, %v472_v38  ;;  %v508_v42 = vld [vmem:[#allocation4 + $0xbb8] sm:$0xff]  ;;  %v507_v52 = vld [vmem:[#allocation4 + $0xbb0] sm:$0xff] }
 0x168   :  { %2339 = vmatpush1.bf16.msra.mxu0 %v2338_v5  ;;  %v2358_v5 = vpack.c.bf16 %v1321_v63, %v1319_v62  ;;  %v1337_v50 = vld [vmem:[#allocation7 + $0x1b0] sm:$0xff]  ;;  %v1342_v54 = vld [vmem:[#allocation7 + $0x1d8] sm:$0xff] }
 0x169   :  { %2341 = vmatprep.subr.bf16.mxu0 %v2340_v8  ;;  %v2360_v8 = vpack.c.bf16 %v1326_v3, %v1324_v2  ;;  %v512_v38 = vld [vmem:[#allocation4 + $0xbd8] sm:$0xff]  ;;  %v511_v62 = vld [vmem:[#allocation4 + $0xbd0] sm:$0xff] }
 0x16a   :  { %2215 = vmatpush1.bf16.msra.mxu1 %v2214_v6  ;;  %v2234_v6 = vpack.c.bf16 %v475_v1, %v471_v59  ;;  %v516_v56 = vld [vmem:[#allocation4 + $0xbf8] sm:$0xff]  ;;  %v2376_v59 = vpack.c.bf16 %v1342_v54, %v1340_v53  ;;  %v515_v63 = vld [vmem:[#allocation4 + $0xbf0] sm:$0xff]  ;;  %v1343_v54 = vld [vmem:[#allocation7 + $0x1e0] sm:$0xff] }
 0x16b   :  { %2217 = vmatprep.subr.bf16.mxu1 %v2216_v12  ;;  %v2236_v12 = vpack.c.bf16 %v484_v33, %v480_v4  ;;  %v524_v1 = vld [vmem:[#allocation4 + $0xc38] sm:$0xff]  ;;  %v2254_v2 = vpack.c.bf16 %v515_v63, %v511_v62  ;;  %v519_v4 = vld [vmem:[#allocation4 + $0xc10] sm:$0xff] }
 0x16c   :  { %2343 = vmatpush1.bf16.msra.mxu0 %v2342_v17  ;;  %v2362_v17 = vpack.c.bf16 %v1325_v10, %v1323_v9  ;;  %v523_v33 = vld [vmem:[#allocation4 + $0xc30] sm:$0xff]  ;;  %v588_v62 = vld [vmem:[#allocation4 + $0xe38] sm:$0xff] }
 0x16d   :  { %2345 = vmatprep.subr.bf16.mxu0 %v2344_v20  ;;  %v2364_v20 = vpack.c.bf16 %v1330_v15, %v1328_v14  ;;  %v527_v9 = vld [vmem:[#allocation4 + $0xc50] sm:$0xff] }
 0x16e   :  { %2219 = vmatpush1.bf16.msra.mxu1 %v2218_v18  ;;  %v2238_v18 = vpack.c.bf16 %v483_v13, %v479_v7  ;;  %v2258_v7 = vpack.c.bf16 %v523_v33, %v519_v4  ;;  %v531_v10 = vld [vmem:[#allocation4 + $0xc70] sm:$0xff]  ;;  %v540_v13 = vld [vmem:[#allocation4 + $0xcb8] sm:$0xff] }
 0x16f   :  { %2221 = vmatprep.subr.bf16.mxu1 %v2220_v34  ;;  %v2240_v34 = vpack.c.bf16 %v492_v16, %v488_v25  ;;  %v2262_v14 = vpack.c.bf16 %v531_v10, %v527_v9  ;;  %v535_v25 = vld [vmem:[#allocation4 + $0xc90] sm:$0xff]  ;;  %v596_v4 = vld [vmem:[#allocation4 + $0xe78] sm:$0xff] }
 0x170   :  { %2347 = vmatpush1.bf16.msra.mxu0 %v2346_v29  ;;  %v2366_v29 = vpack.c.bf16 %v1329_v22, %v1327_v21  ;;  %v539_v16 = vld [vmem:[#allocation4 + $0xcb0] sm:$0xff] }
 0x171   :  { %2349 = vmatprep.subr.bf16.mxu0 %v2348_v31  ;;  %v2368_v31 = vpack.c.bf16 %v1334_v26, %v1332_v24  ;;  %v543_v21 = vld [vmem:[#allocation4 + $0xcd0] sm:$0xff] }
 0x172   :  { %2223 = vmatpush1.bf16.msra.mxu1 %v2222_v30  ;;  %v2242_v30 = vpack.c.bf16 %v491_v23, %v487_v19  ;;  %v2266_v19 = vpack.c.bf16 %v539_v16, %v535_v25  ;;  %v547_v22 = vld [vmem:[#allocation4 + $0xcf0] sm:$0xff]  ;;  %v556_v23 = vld [vmem:[#allocation4 + $0xd38] sm:$0xff] }
 0x173   :  { %2225 = vmatprep.subr.bf16.mxu1 %v2224_v48  ;;  %v2244_v48 = vpack.c.bf16 %v500_v28, %v496_v27  ;;  %v551_v26 = vld [vmem:[#allocation4 + $0xd10] sm:$0xff]  ;;  %v560_v27 = vld [vmem:[#allocation4 + $0xd58] sm:$0xff] }
 0x174   :  { %2351 = vmatpush1.bf16.msra.mxu0 %v2350_v43  ;;  %v2370_v43 = vpack.c.bf16 %v1333_v35, %v1331_v32  ;;  %v564_v28 = vld [vmem:[#allocation4 + $0xd78] sm:$0xff]  ;;  %v1348_v33 = vld [vmem:[#allocation7 + $0x208] sm:$0xff] }
 0x175   :  { %2353 = vmatprep.subr.bf16.mxu0 %v2352_v47  ;;  %v2372_v47 = vpack.c.bf16 %v1338_v39, %v1336_v37  ;;  %v568_v32 = vld [vmem:[#allocation4 + $0xd98] sm:$0xff]  ;;  %v591_v9 = vld [vmem:[#allocation4 + $0xe50] sm:$0xff] }
 0x176   :  { %2227 = vmatpush1.bf16.msra.mxu1 %v2226_v45  ;;  %v2246_v45 = vpack.c.bf16 %v499_v36, %v495_v41  ;;  %v559_v41 = vld [vmem:[#allocation4 + $0xd50] sm:$0xff]  ;;  %v572_v35 = vld [vmem:[#allocation4 + $0xdb8] sm:$0xff]  ;;  %v1339_v36 = vld [vmem:[#allocation7 + $0x1c0] sm:$0xff] }
 0x177   :  { %2229 = vmatprep.subr.bf16.mxu1 %v2228_v51  ;;  %v2248_v51 = vpack.c.bf16 %v508_v42, %v504_v40  ;;  %v1341_v37 = vld [vmem:[#allocation7 + $0x1d0] sm:$0xff]  ;;  %v2280_v39 = vpack.c.bf16 %v572_v35, %v568_v32 }
 0x178   :  { %2355 = vmatpush1.bf16.msra.mxu0 %v2354_v57  ;;  %v2374_v57 = vpack.c.bf16 %v1337_v50, %v1335_v49  ;;  %v567_v40 = vld [vmem:[#allocation4 + $0xd90] sm:$0xff]  ;;  %v632_v32 = vld [vmem:[#allocation4 + $0xf98] sm:$0xff] }
 0x179   :  { %2357 = vmatprep.subr.bf16.mxu0 %v2356_v60  ;;  %v2252_v60 = vpack.c.bf16 %v516_v56, %v512_v38  ;;  %v571_v42 = vld [vmem:[#allocation4 + $0xdb0] sm:$0xff]  ;;  %v636_v35 = vld [vmem:[#allocation4 + $0xfb8] sm:$0xff] }
 0x17a   :  { %2231 = vmatpush1.bf16.msra.mxu1 %v2230_v58  ;;  %v2250_v58 = vpack.c.bf16 %v507_v52, %v503_v46  ;;  %v576_v46 = vld [vmem:[#allocation4 + $0xdd8] sm:$0xff]  ;;  %v1344_v50 = vld [vmem:[#allocation7 + $0x1e8] sm:$0xff]  ;;  %v2282_v52 = vpack.c.bf16 %v571_v42, %v567_v40 }
 0x17b   :  { %2233 = vmatprep.subr.bf16.mxu1 %v2232_v0  ;;  %v520_v0 = vld [vmem:[#allocation4 + $0xc18] sm:$0xff]  ;;  %v595_v10 = vld [vmem:[#allocation4 + $0xe70] sm:$0xff] }
 0x17c   :  { %2359 = vmatpush1.bf16.msra.mxu0 %v2358_v5  ;;  %v2256_v3 = vpack.c.bf16 %v524_v1, %v520_v0  ;;  %v528_v5 = vld [vmem:[#allocation4 + $0xc58] sm:$0xff]  ;;  %v583_v1 = vld [vmem:[#allocation4 + $0xe10] sm:$0xff] }
 0x17d   :  { %2361 = vmatprep.subr.bf16.mxu0 %v2360_v8  ;;  %v1345_v38 = vld [vmem:[#allocation7 + $0x1f0] sm:$0xff] }
 0x17e   :  { %2235 = vmatpush1.bf16.msra.mxu1 %v2234_v6  ;;  %v532_v6 = vld [vmem:[#allocation4 + $0xc78] sm:$0xff]  ;;  %v599_v25 = vld [vmem:[#allocation4 + $0xe90] sm:$0xff] }
 0x17f   :  { %2237 = vmatprep.subr.bf16.mxu1 %v2236_v12  ;;  %v2260_v8 = vpack.c.bf16 %v532_v6, %v528_v5  ;;  %v536_v12 = vld [vmem:[#allocation4 + $0xc98] sm:$0xff]  ;;  %v603_v16 = vld [vmem:[#allocation4 + $0xeb0] sm:$0xff] }
 0x180   :  { %2363 = vmatpush1.bf16.msra.mxu0 %v2362_v17  ;;  %v2264_v15 = vpack.c.bf16 %v540_v13, %v536_v12  ;;  %v544_v17 = vld [vmem:[#allocation4 + $0xcd8] sm:$0xff] }
 0x181   :  { %2365 = vmatprep.subr.bf16.mxu0 %v2364_v20  ;;  %v1350_v5 = vld [vmem:[#allocation7 + $0x218] sm:$0xff] }
 0x182   :  { %2239 = vmatpush1.bf16.msra.mxu1 %v2238_v18  ;;  %v548_v18 = vld [vmem:[#allocation4 + $0xcf8] sm:$0xff]  ;;  %v2384_v6 = vpack.c.bf16 %v1350_v5, %v1348_v33 }
 0x183   :  { %2241 = vmatprep.subr.bf16.mxu1 %v2240_v34  ;;  %v2268_v20 = vpack.c.bf16 %v548_v18, %v544_v17  ;;  %v552_v34 = vld [vmem:[#allocation4 + $0xd18] sm:$0xff] }
 0x184   :  { %2367 = vmatpush1.bf16.msra.mxu0 %v2366_v29  ;;  %v2272_v24 = vpack.c.bf16 %v556_v23, %v552_v34  ;;  %v600_v12 = vld [vmem:[#allocation4 + $0xe98] sm:$0xff] }
 0x185   :  { %2369 = vmatprep.subr.bf16.mxu0 %v2368_v31  ;;  %v563_v31 = vld [vmem:[#allocation4 + $0xd70] sm:$0xff]  ;;  %v604_v13 = vld [vmem:[#allocation4 + $0xeb8] sm:$0xff] }
 0x186   :  { %2243 = vmatpush1.bf16.msra.mxu1 %v2242_v30  ;;  %v2276_v30 = vpack.c.bf16 %v564_v28, %v560_v27  ;;  %v608_v17 = vld [vmem:[#allocation4 + $0xed8] sm:$0xff] }
 0x187   :  { %2245 = vmatprep.subr.bf16.mxu1 %v2244_v48  ;;  %v2278_v48 = vpack.c.bf16 %v563_v31, %v559_v41  ;;  %v612_v18 = vld [vmem:[#allocation4 + $0xef8] sm:$0xff]  ;;  %v623_v41 = vld [vmem:[#allocation4 + $0xf50] sm:$0xff] }
 0x188   :  { %2371 = vmatpush1.bf16.msra.mxu0 %v2370_v43  ;;  %v2378_v43 = vpack.c.bf16 %v1341_v37, %v1339_v36  ;;  %v616_v34 = vld [vmem:[#allocation4 + $0xf18] sm:$0xff]  ;;  %v627_v31 = vld [vmem:[#allocation4 + $0xf70] sm:$0xff]  ;;  %v2312_v36 = vpack.c.bf16 %v636_v35, %v632_v32 }
 0x189   :  { %2373 = vmatprep.subr.bf16.mxu0 %v2372_v47  ;;  %v580_v47 = vld [vmem:[#allocation4 + $0xdf8] sm:$0xff]  ;;  %v631_v37 = vld [vmem:[#allocation4 + $0xf90] sm:$0xff] }
 0x18a   :  { %2247 = vmatpush1.bf16.msra.mxu1 %v2246_v45  ;;  %v2284_v56 = vpack.c.bf16 %v580_v47, %v576_v46  ;;  %v620_v23 = vld [vmem:[#allocation4 + $0xf38] sm:$0xff]  ;;  %v639_v47 = vld [vmem:[#allocation4 + $0xfd0] sm:$0xff] }
 0x18b   :  { %2249 = vmatprep.subr.bf16.mxu1 %v2248_v51  ;;  %v1346_v51 = vld [vmem:[#allocation7 + $0x1f8] sm:$0xff]  ;;  %v1373_v32 = vld [vmem:[#allocation7 + $0x2d0] sm:$0xff]  ;;  %v1376_v35 = vld [vmem:[#allocation7 + $0x2e8] sm:$0xff] }
 0x18c   :  { %2375 = vmatpush1.bf16.msra.mxu0 %v2374_v57  ;;  %v2380_v53 = vpack.c.bf16 %v1346_v51, %v1344_v50  ;;  %v575_v57 = vld [vmem:[#allocation4 + $0xdd0] sm:$0xff]  ;;  %v624_v27 = vld [vmem:[#allocation4 + $0xf58] sm:$0xff] }
 0x18d   :  { %2377 = vmatprep.subr.bf16.mxu0 %v2376_v59  ;;  %v2382_v59 = vpack.c.bf16 %v1345_v38, %v1343_v54  ;;  %v628_v28 = vld [vmem:[#allocation4 + $0xf78] sm:$0xff]  ;;  %v643_v50 = vld [vmem:[#allocation4 + $0xff0] sm:$0xff]  ;;  %v653_v54 = vsub.s32 1, %v2871_v61 }
 0x18e   :  { %2251 = vmatpush1.bf16.msra.mxu1 %v2250_v58  ;;  %v579_v58 = vld [vmem:[#allocation4 + $0xdf0] sm:$0xff]  ;;  %v640_v40 = vld [vmem:[#allocation4 + $0xfd8] sm:$0xff]  ;;  %v2318_v51 = vpack.c.bf16 %v643_v50, %v639_v47  ;;  %v1379_v50 = vld [vmem:[#allocation7 + $0x300] sm:$0xff] }
 0x18f   :  { %2253 = vmatprep.subr.bf16.mxu1 %v2252_v60  ;;  %v584_v60 = vld [vmem:[#allocation4 + $0xe18] sm:$0xff]  ;;  %v2286_v63 = vpack.c.bf16 %v579_v58, %v575_v57 }
 0x190   :  { %2379 = vmatpush1.bf16.msra.mxu0 %v2378_v43  ;;  %v2288_v0 = vpack.c.bf16 %v588_v62, %v584_v60  ;;  %v644_v42 = vld [vmem:[#allocation4 + $0xff8] sm:$0xff]  ;;  %v1347_v62 = vld [vmem:[#allocation7 + $0x200] sm:$0xff] }
 0x191   :  { %2381 = vmatprep.subr.bf16.mxu0 %v2380_v53  ;;  %v2316_v46 = vpack.c.bf16 %v644_v42, %v640_v40  ;;  %v2930_v53 = vld [vmem:[#allocation6] sm:$0xf]  ;;  %v1377_v40 = vld [vmem:[#allocation7 + $0x2f0] sm:$0xff]  ;;  %v1380_v42 = vld [vmem:[#allocation7 + $0x308] sm:$0xff] }
 0x192   :  { %2255 = vmatpush1.bf16.msra.mxu1 %v2254_v2  ;;  %v587_v2 = vld [vmem:[#allocation4 + $0xe30] sm:$0xff] }
 0x193   :  { %2257 = vmatprep.subr.bf16.mxu1 %v2256_v3  ;;  %v592_v3 = vld [vmem:[#allocation4 + $0xe58] sm:$0xff] }
 0x194   :  { %2383 = vmatpush1.bf16.msra.mxu0 %v2382_v59 }
 0x195   :  { %1202 = vmatmul.mubr.f32.vlgmr.msra.gmra.mrb[2].mxu1 %v2899_v44  ;;  %v2270_v44 = vpack.c.bf16 %v547_v22, %v543_v21  ;;  %2385 = vmatprep.subr.bf16.mxu0 %v2384_v6  ;;  %v607_v21 = vld [vmem:[#allocation4 + $0xed0] sm:$0xff]  ;;  %v1351_v6 = vld [vmem:[#allocation7 + $0x220] sm:$0xff] }
 0x196   :  { %2259 = vmatpush1.bf16.msra.mxu1 %v2258_v7  ;;  %1272 = vmatprep.mubr.f32.mxu1 %v2913_v11  ;;  %v555_v11 = vld [vmem:[#allocation4 + $0xd30] sm:$0xff]  ;;  %v2290_v7 = vpack.c.bf16 %v587_v2, %v583_v1  ;;  %v1354_v2 = vld [vmem:[#allocation7 + $0x238] sm:$0xff] }
 0x197   :  { %2261 = vmatprep.subr.bf16.mxu1 %v2260_v8  ;;  %v2274_v29 = vpack.c.bf16 %v555_v11, %v551_v26  ;;  %v2292_v8 = vpack.c.bf16 %v596_v4, %v592_v3  ;;  %v611_v22 = vld [vmem:[#allocation4 + $0xef0] sm:$0xff] }
 0x198   :  { %v615_v26 = vld [vmem:[#allocation4 + $0xf10] sm:$0xff] }
 0x199   :  { %v619_v11 = vld [vmem:[#allocation4 + $0xf30] sm:$0xff] }
 0x19a   :  { %2263 = vmatpush1.bf16.msra.mxu1 %v2262_v14  ;;  %v2294_v14 = vpack.c.bf16 %v595_v10, %v591_v9  ;;  %v1352_v1 = vld [vmem:[#allocation7 + $0x228] sm:$0xff]  ;;  %v1358_v9 = vld [vmem:[#allocation7 + $0x258] sm:$0xff]  ;;  %v1355_v10 = vld [vmem:[#allocation7 + $0x240] sm:$0xff] }
 0x19b   :  { %2265 = vmatprep.subr.bf16.mxu1 %v2264_v15  ;;  %v2296_v15 = vpack.c.bf16 %v604_v13, %v600_v12  ;;  %v2388_v5 = vpack.c.bf16 %v1354_v2, %v1352_v1  ;;  %v1357_v12 = vld [vmem:[#allocation7 + $0x250] sm:$0xff]  ;;  %v1360_v13 = vld [vmem:[#allocation7 + $0x268] sm:$0xff]  ;;  %v1387_v1 = vld [vmem:[#allocation7 + $0x340] sm:$0xff] }
 0x19c   :  { %v1389_v2 = vld [vmem:[#allocation7 + $0x350] sm:$0xff] }
 0x19e   :  { %2267 = vmatpush1.bf16.msra.mxu1 %v2266_v19  ;;  %v2298_v19 = vpack.c.bf16 %v603_v16, %v599_v25  ;;  %v1359_v16 = vld [vmem:[#allocation7 + $0x260] sm:$0xff] }
 0x19f   :  { %2269 = vmatprep.subr.bf16.mxu1 %v2268_v20  ;;  %v2300_v20 = vpack.c.bf16 %v612_v18, %v608_v17  ;;  %v1361_v17 = vld [vmem:[#allocation7 + $0x270] sm:$0xff]  ;;  %v1364_v18 = vld [vmem:[#allocation7 + $0x288] sm:$0xff] }
 0x1a2   :  { %2271 = vmatpush1.bf16.msra.mxu1 %v2270_v44  ;;  %v2302_v44 = vpack.c.bf16 %v611_v22, %v607_v21  ;;  %v1363_v22 = vld [vmem:[#allocation7 + $0x280] sm:$0xff] }
 0x1a3   :  { %2273 = vmatprep.subr.bf16.mxu1 %v2272_v24  ;;  %v2304_v24 = vpack.c.bf16 %v620_v23, %v616_v34  ;;  %v1365_v34 = vld [vmem:[#allocation7 + $0x290] sm:$0xff]  ;;  %v1368_v23 = vld [vmem:[#allocation7 + $0x2a8] sm:$0xff] }
 0x1a6   :  { %2275 = vmatpush1.bf16.msra.mxu1 %v2274_v29  ;;  %v2306_v29 = vpack.c.bf16 %v619_v11, %v615_v26  ;;  %v1367_v11 = vld [vmem:[#allocation7 + $0x2a0] sm:$0xff] }
 0x1a7   :  { %2277 = vmatprep.subr.bf16.mxu1 %v2276_v30  ;;  %v2308_v30 = vpack.c.bf16 %v628_v28, %v624_v27  ;;  %v1369_v27 = vld [vmem:[#allocation7 + $0x2b0] sm:$0xff]  ;;  %v1372_v28 = vld [vmem:[#allocation7 + $0x2c8] sm:$0xff] }
 0x1a8   :  { %v2924_v45 = vpop.f32.mrb[0].mxu1 }
 0x1a9   :  { %v2926_v49 = vpop.f32.mrb[1].mxu1 }
 0x1aa   :  { %2279 = vmatpush1.bf16.msra.mxu1 %v2278_v48  ;;  %v2310_v48 = vpack.c.bf16 %v627_v31, %v623_v41  ;;  %v1371_v31 = vld [vmem:[#allocation7 + $0x2c0] sm:$0xff] }
 0x1ab   :  { %2281 = vmatprep.subr.bf16.mxu1 %v2280_v39  ;;  %v635_v39 = vld [vmem:[#allocation4 + $0xfb0] sm:$0xff] }
 0x1ac   :  { %v2314_v43 = vpack.c.bf16 %v635_v39, %v631_v37  ;;  %v1375_v39 = vld [vmem:[#allocation7 + $0x2e0] sm:$0xff] }
 0x1ae   :  { %2283 = vmatpush1.bf16.msra.mxu1 %v2282_v52  ;;  %v649_v52 = vsub.s32 0, %v2871_v61 }
 0x1af   :  { %2285 = vmatprep.subr.bf16.mxu1 %v2284_v56  ;;  %v654_v56 = vrot.slane %v2930_v53, %v653_v54 }
 0x1b0   :  { %v650_v38 = vrot.slane %v2930_v53, %v649_v52 }
 0x1b1   :  { %v780_v58 = vadd.f32 %v2926_v49, %v654_v56  ;;  %v1386_v56 = vld [vmem:[#allocation7 + $0x338] sm:$0xff] }
 0x1b2   :  { %2287 = vmatpush1.bf16.msra.mxu1 %v2286_v63  ;;  %v778_v57 = vadd.f32 %v2924_v45, %v650_v38  ;;  %v1349_v63 = vld [vmem:[#allocation7 + $0x210] sm:$0xff]  ;;  %v1384_v38 = vld [vmem:[#allocation7 + $0x328] sm:$0xff] }
 0x1b3   :  { %2289 = vmatprep.subr.bf16.mxu1 %v2288_v0  ;;  %v2386_v4 = vpack.c.bf16 %v1349_v63, %v1347_v62  ;;  %v1390_v62 = vld [vmem:[#allocation7 + $0x358] sm:$0xff] }
 0x1b6   :  { %2291 = vmatpush1.bf16.msra.mxu1 %v2290_v7  ;;  %v1353_v7 = vld [vmem:[#allocation7 + $0x230] sm:$0xff] }
 0x1b7   :  { %2293 = vmatprep.subr.bf16.mxu1 %v2292_v8  ;;  %v1356_v8 = vld [vmem:[#allocation7 + $0x248] sm:$0xff]  ;;  %v2390_v45 = vpack.c.bf16 %v1353_v7, %v1351_v6  ;;  %v1391_v6 = vld [vmem:[#allocation7 + $0x360] sm:$0xff]  ;;  %v1393_v7 = vld [vmem:[#allocation7 + $0x370] sm:$0xff] }
 0x1b8   :  { %v2392_v49 = vpack.c.bf16 %v1358_v9, %v1356_v8  ;;  %v1396_v8 = vld [vmem:[#allocation7 + $0x388] sm:$0xff]  ;;  %v1398_v9 = vld [vmem:[#allocation7 + $0x398] sm:$0xff] }
 0x1ba   :  { %2295 = vmatpush1.bf16.msra.mxu1 %v2294_v14  ;;  %v1362_v14 = vld [vmem:[#allocation7 + $0x278] sm:$0xff] }
 0x1bb   :  { %2297 = vmatprep.subr.bf16.mxu1 %v2296_v15  ;;  %v2394_v15 = vpack.c.bf16 %v1357_v12, %v1355_v10  ;;  %v2396_v25 = vpack.c.bf16 %v1362_v14, %v1360_v13  ;;  %v1395_v10 = vld [vmem:[#allocation7 + $0x380] sm:$0xff]  ;;  %v1397_v12 = vld [vmem:[#allocation7 + $0x390] sm:$0xff]  ;;  %v1400_v13 = vld [vmem:[#allocation7 + $0x3a8] sm:$0xff] }
 0x1bc   :  { %v1402_v14 = vld [vmem:[#allocation7 + $0x3b8] sm:$0xff] }
 0x1be   :  { %2299 = vmatpush1.bf16.msra.mxu1 %v2298_v19  ;;  %v1366_v19 = vld [vmem:[#allocation7 + $0x298] sm:$0xff] }
 0x1bf   :  { %2301 = vmatprep.subr.bf16.mxu1 %v2300_v20  ;;  %v2398_v20 = vpack.c.bf16 %v1361_v17, %v1359_v16  ;;  %v2400_v21 = vpack.c.bf16 %v1366_v19, %v1364_v18  ;;  %v1399_v16 = vld [vmem:[#allocation7 + $0x3a0] sm:$0xff]  ;;  %v1401_v17 = vld [vmem:[#allocation7 + $0x3b0] sm:$0xff]  ;;  %v1404_v18 = vld [vmem:[#allocation7 + $0x3c8] sm:$0xff] }
 0x1c0   :  { %v1406_v19 = vld [vmem:[#allocation7 + $0x3d8] sm:$0xff] }
 0x1c2   :  { %2303 = vmatpush1.bf16.msra.mxu1 %v2302_v44  ;;  %v1370_v44 = vld [vmem:[#allocation7 + $0x2b8] sm:$0xff] }
 0x1c3   :  { %2305 = vmatprep.subr.bf16.mxu1 %v2304_v24  ;;  %v2402_v24 = vpack.c.bf16 %v1365_v34, %v1363_v22  ;;  %v2404_v26 = vpack.c.bf16 %v1370_v44, %v1368_v23  ;;  %v1403_v22 = vld [vmem:[#allocation7 + $0x3c0] sm:$0xff]  ;;  %v1405_v34 = vld [vmem:[#allocation7 + $0x3d0] sm:$0xff]  ;;  %v1408_v23 = vld [vmem:[#allocation7 + $0x3e8] sm:$0xff] }
 0x1c4   :  { %v1410_v44 = vld [vmem:[#allocation7 + $0x3f8] sm:$0xff] }
 0x1c6   :  { %2307 = vmatpush1.bf16.msra.mxu1 %v2306_v29  ;;  %v1374_v29 = vld [vmem:[#allocation7 + $0x2d8] sm:$0xff] }
 0x1c7   :  { %2309 = vmatprep.subr.bf16.mxu1 %v2308_v30  ;;  %v2406_v30 = vpack.c.bf16 %v1369_v27, %v1367_v11  ;;  %v2408_v41 = vpack.c.bf16 %v1374_v29, %v1372_v28  ;;  %v1407_v11 = vld [vmem:[#allocation7 + $0x3e0] sm:$0xff]  ;;  %v1409_v27 = vld [vmem:[#allocation7 + $0x3f0] sm:$0xff] }
 0x1c8   :  { %v1583_v28 = vld [vmem:[#allocation10 + $0x80] sm:$0xff]  ;;  %v1584_v29 = vld [vmem:[#allocation10 + $0x88] sm:$0xff] }
 0x1ca   :  { %2311 = vmatpush1.bf16.msra.mxu1 %v2310_v48  ;;  %v1378_v48 = vld [vmem:[#allocation7 + $0x2f8] sm:$0xff] }
 0x1cb   :  { %2313 = vmatprep.subr.bf16.mxu1 %v2312_v36  ;;  %v2410_v36 = vpack.c.bf16 %v1373_v32, %v1371_v31  ;;  %v2412_v37 = vpack.c.bf16 %v1378_v48, %v1376_v35  ;;  %v657_v31 = vsub.s32 2, %v2871_v61  ;;  %v661_v32 = vsub.s32 3, %v2871_v61 }
 0x1cd   :  { %v658_v35 = vrot.slane %v2930_v53, %v657_v31  ;;  %v662_v48 = vrot.slane %v2930_v53, %v661_v32 }
 0x1ce   :  { %2315 = vmatpush1.bf16.msra.mxu1 %v2314_v43  ;;  %v1382_v43 = vld [vmem:[#allocation7 + $0x318] sm:$0xff] }
 0x1cf   :  { %2317 = vmatprep.subr.bf16.mxu1 %v2316_v46  ;;  %v2414_v46 = vpack.c.bf16 %v1377_v40, %v1375_v39  ;;  %v2416_v47 = vpack.c.bf16 %v1382_v43, %v1380_v42  ;;  %v1567_v40 = vld [vmem:[#allocation10] sm:$0xff]  ;;  %v1568_v42 = vld [vmem:[#allocation10 + $0x8] sm:$0xff] }
 0x1d2   :  { %2319 = vmatpush1.bf16.msra.mxu1 %v2318_v51  ;;  %v1381_v51 = vld [vmem:[#allocation7 + $0x310] sm:$0xff] }
 0x1d5   :  { %1273 = vmatmul.mubr.f32.vlgmr.msra.gmra.mrb[2].mxu1 %v2909_v55 }
 0x22a   :  { %v990_v59 = vpop.f32.mrb[0].mxu0 }
 0x22b   :  { %v2481_v55 = vadd.f32 %v990_v59, %v778_v57  ;;  %v992_v60 = vpop.f32.mrb[1].mxu0  ;;  %v2418_v57 = vpack.c.bf16 %v1381_v51, %v1379_v50  ;;  %v1383_v59 = vld [vmem:[#allocation7 + $0x320] sm:$0xff]  ;;  %v2450_v51 = vpack.c.bf16 %v1568_v42, %v1567_v40 }
 0x22c   :  { %v2483_v0 = vadd.f32 %v992_v60, %v780_v58  ;;  %v2420_v58 = vpack.c.bf16 %v1386_v56, %v1384_v38  ;;  %v1388_v60 = vld [vmem:[#allocation7 + $0x348] sm:$0xff] }
 0x22d   :  { %v1279_v33 = vmax.f32 %v2481_v55, 0.0  ;;  %v1385_v55 = vld [vmem:[#allocation7 + $0x330] sm:$0xff] }
 0x22e   :  { %v1280_v3 = vmax.f32 %v2483_v0, 0.0  ;;  %v2422_v63 = vpack.c.bf16 %v1385_v55, %v1383_v59  ;;  %v2424_v0 = vpack.c.bf16 %v1390_v62, %v1388_v60  ;;  %v1587_v59 = vld [vmem:[#allocation10 + $0xa0] sm:$0xff]  ;;  %v1588_v55 = vld [vmem:[#allocation10 + $0xa8] sm:$0xff] }
 0x22f   :  { %v2456_v60 = vpack.c.bf16 %v1588_v55, %v1587_v59  ;;  %v1571_v62 = vld [vmem:[#allocation10 + $0x20] sm:$0xff] }
 0x230   :  { %1487 = vmatprep.mubr.f32.mxu0 %v1280_v3  ;;  %v1392_v3 = vld [vmem:[#allocation7 + $0x368] sm:$0xff] }
 0x231   :  { %1488 = vmatmul.mubr.f32.vlgmr.msra.gmra.mrb[2].mxu0 %v1279_v33  ;;  %v2426_v33 = vpack.c.bf16 %v1389_v2, %v1387_v1  ;;  %v1590_v1 = vld [vmem:[#allocation10 + $0xb8] sm:$0xff] }
 0x232   :  { %2387 = vmatpush1.bf16.msra.mxu0 %v2386_v4  ;;  %v1394_v4 = vld [vmem:[#allocation7 + $0x378] sm:$0xff] }
 0x233   :  { %2389 = vmatprep.subr.bf16.mxu0 %v2388_v5  ;;  %v2428_v5 = vpack.c.bf16 %v1394_v4, %v1392_v3  ;;  %v1573_v4 = vld [vmem:[#allocation10 + $0x30] sm:$0xff] }
 0x236   :  { %2391 = vmatpush1.bf16.msra.mxu0 %v2390_v45  ;;  %v2430_v45 = vpack.c.bf16 %v1393_v7, %v1391_v6  ;;  %v1592_v6 = vld [vmem:[#allocation10 + $0xc8] sm:$0xff] }
 0x237   :  { %2393 = vmatprep.subr.bf16.mxu0 %v2392_v49  ;;  %v2432_v49 = vpack.c.bf16 %v1398_v9, %v1396_v8  ;;  %v1575_v9 = vld [vmem:[#allocation10 + $0x40] sm:$0xff] }
 0x23a   :  { %2395 = vmatpush1.bf16.msra.mxu0 %v2394_v15  ;;  %v2434_v15 = vpack.c.bf16 %v1397_v12, %v1395_v10  ;;  %v1594_v10 = vld [vmem:[#allocation10 + $0xd8] sm:$0xff] }
 0x23b   :  { %2397 = vmatprep.subr.bf16.mxu0 %v2396_v25  ;;  %v2436_v25 = vpack.c.bf16 %v1402_v14, %v1400_v13  ;;  %v1577_v14 = vld [vmem:[#allocation10 + $0x50] sm:$0xff] }
 0x23e   :  { %2399 = vmatpush1.bf16.msra.mxu0 %v2398_v20  ;;  %v2438_v20 = vpack.c.bf16 %v1401_v17, %v1399_v16  ;;  %v1596_v16 = vld [vmem:[#allocation10 + $0xe8] sm:$0xff] }
 0x23f   :  { %2401 = vmatprep.subr.bf16.mxu0 %v2400_v21  ;;  %v2440_v21 = vpack.c.bf16 %v1406_v19, %v1404_v18  ;;  %v1579_v19 = vld [vmem:[#allocation10 + $0x60] sm:$0xff] }
 0x242   :  { %2403 = vmatpush1.bf16.msra.mxu0 %v2402_v24  ;;  %v2442_v24 = vpack.c.bf16 %v1405_v34, %v1403_v22  ;;  %v1597_v22 = vld [vmem:[#allocation10 + $0xf0] sm:$0xff]  ;;  %v1598_v34 = vld [vmem:[#allocation10 + $0xf8] sm:$0xff] }
 0x243   :  { %2405 = vmatprep.subr.bf16.mxu0 %v2404_v26  ;;  %v2444_v26 = vpack.c.bf16 %v1410_v44, %v1408_v23  ;;  %v2476_v23 = vpack.c.bf16 %v1598_v34, %v1597_v22  ;;  %v1581_v44 = vld [vmem:[#allocation10 + $0x70] sm:$0xff] }
 0x246   :  { %2407 = vmatpush1.bf16.msra.mxu0 %v2406_v30  ;;  %v2446_v30 = vpack.c.bf16 %v1409_v27, %v1407_v11  ;;  %v1411_v11 = vld [vmem:[#allocation9] sm:$0x3] }
 0x247   :  { %2409 = vmatprep.subr.bf16.mxu0 %v2408_v41  ;;  %v2448_v41 = vpack.c.bf16 %v1584_v29, %v1583_v28  ;;  %v1416_v27 = vrot.slane %v1411_v11, %v649_v52  ;;  %v1420_v28 = vrot.slane %v1411_v11, %v653_v54  ;;  %v2724_v52 = vmov 0   ;;  %v1765_v54 = vld [vmem:[#allocation12] ss:$0 sm:$0xff] }
 0x248   :  { %2518 = vset.pattern.permute.xlu0 %v2724_v52 }
 0x24a   :  { %2411 = vmatpush1.bf16.msra.mxu0 %v2410_v36 }
 0x24b   :  { %2413 = vmatprep.subr.bf16.mxu0 %v2412_v37 }
 0x24e   :  { %2415 = vmatpush1.bf16.msra.mxu0 %v2414_v46  ;;  %v1585_v46 = vld [vmem:[#allocation10 + $0x90] sm:$0xff] }
 0x24f   :  { %2417 = vmatprep.subr.bf16.mxu0 %v2416_v47  ;;  %v1586_v47 = vld [vmem:[#allocation10 + $0x98] sm:$0xff] }
 0x250   :  { %v2452_v56 = vpack.c.bf16 %v1586_v47, %v1585_v46 }
 0x252   :  { %2419 = vmatpush1.bf16.msra.mxu0 %v2418_v57  ;;  %v1569_v57 = vld [vmem:[#allocation10 + $0x10] sm:$0xff] }
 0x253   :  { %2421 = vmatprep.subr.bf16.mxu0 %v2420_v58  ;;  %v1570_v58 = vld [vmem:[#allocation10 + $0x18] sm:$0xff] }
 0x254   :  { %v2454_v53 = vpack.c.bf16 %v1570_v58, %v1569_v57 }
 0x256   :  { %2423 = vmatpush1.bf16.msra.mxu0 %v2422_v63  ;;  %v1572_v63 = vld [vmem:[#allocation10 + $0x28] sm:$0xff] }
 0x257   :  { %2425 = vmatprep.subr.bf16.mxu0 %v2424_v0  ;;  %v1589_v0 = vld [vmem:[#allocation10 + $0xb0] sm:$0xff]  ;;  %v2458_v2 = vpack.c.bf16 %v1572_v63, %v1571_v62 }
 0x258   :  { %v2460_v3 = vpack.c.bf16 %v1590_v1, %v1589_v0 }
 0x25a   :  { %2427 = vmatpush1.bf16.msra.mxu0 %v2426_v33  ;;  %v1574_v33 = vld [vmem:[#allocation10 + $0x38] sm:$0xff] }
 0x25b   :  { %2429 = vmatprep.subr.bf16.mxu0 %v2428_v5  ;;  %v1591_v5 = vld [vmem:[#allocation10 + $0xc0] sm:$0xff]  ;;  %v2462_v7 = vpack.c.bf16 %v1574_v33, %v1573_v4 }
 0x25c   :  { %v2464_v8 = vpack.c.bf16 %v1592_v6, %v1591_v5 }
 0x25e   :  { %2431 = vmatpush1.bf16.msra.mxu0 %v2430_v45  ;;  %v1576_v45 = vld [vmem:[#allocation10 + $0x48] sm:$0xff] }
 0x25f   :  { %2433 = vmatprep.subr.bf16.mxu0 %v2432_v49  ;;  %v1593_v49 = vld [vmem:[#allocation10 + $0xd0] sm:$0xff]  ;;  %v2466_v12 = vpack.c.bf16 %v1576_v45, %v1575_v9 }
 0x260   :  { %v2468_v13 = vpack.c.bf16 %v1594_v10, %v1593_v49 }
 0x262   :  { %2435 = vmatpush1.bf16.msra.mxu0 %v2434_v15  ;;  %v1578_v15 = vld [vmem:[#allocation10 + $0x58] sm:$0xff] }
 0x263   :  { %2437 = vmatprep.subr.bf16.mxu0 %v2436_v25  ;;  %v1595_v25 = vld [vmem:[#allocation10 + $0xe0] sm:$0xff]  ;;  %v2470_v17 = vpack.c.bf16 %v1578_v15, %v1577_v14 }
 0x264   :  { %v2472_v18 = vpack.c.bf16 %v1596_v16, %v1595_v25 }
 0x266   :  { %2439 = vmatpush1.bf16.msra.mxu0 %v2438_v20  ;;  %v1580_v20 = vld [vmem:[#allocation10 + $0x68] sm:$0xff] }
 0x267   :  { %2441 = vmatprep.subr.bf16.mxu0 %v2440_v21  ;;  %v2474_v21 = vpack.c.bf16 %v1580_v20, %v1579_v19 }
 0x26a   :  { %2443 = vmatpush1.bf16.msra.mxu0 %v2442_v24  ;;  %v1582_v24 = vld [vmem:[#allocation10 + $0x78] sm:$0xff] }
 0x26b   :  { %2445 = vmatprep.subr.bf16.mxu0 %v2444_v26  ;;  %v2478_v26 = vpack.c.bf16 %v1582_v24, %v1581_v44 }
 0x26e   :  { %2447 = vmatpush1.bf16.msra.mxu0 %v2446_v30 }
 0x26f   :  { %2449 = vmatprep.subr.bf16.mxu0 %v2448_v41 }
 0x2a8   :  { %v1274_v36 = vpop.f32.mrb[2].mxu1 }
 0x2a9   :  { %v2484_v37 = vadd.f32 %v1274_v36, %v658_v35  ;;  %v1276_v39 = vpop.f32.mrb[3].mxu1  ;;  %v1678_v36 = vld [vmem:[%s2963_s8] sm:$0xff] }
 0x2aa   :  { %v2485_v43 = vadd.f32 %v1276_v39, %v662_v48  ;;  %v2722_v48 = vmov 0.0   ;;  %1681 = vperm.xlu0 %2518, %v1678_v36  }
 0x2ab   :  { %v1281_v38 = vmax.f32 %v2484_v37, 0.0  ;;  %1803 = vmatprep.subr.mxu1 %v2722_v48  ;;  %1805 = vmatprep.mubr.msk.f32.mxu1 %vm2723_vm0, %v2722_v48 }
 0x2ac   :  { %v1282_v50 = vmax.f32 %v2485_v43, 0.0  ;;  %v1677_v43 = vld [vmem:[#allocation13] sm:$0xff] }
 0x2ae   :  { %1558 = vmatprep.mubr.f32.mxu0 %v1282_v50 }
 0x2af   :  { %1559 = vmatmul.mubr.f32.vlgmr.msra.gmra.mrb[2].mxu0 %v1281_v38 }
 0x2b0   :  { %2451 = vmatpush3.bf16.msra.mxu0 %v2450_v51 }
 0x2b1   :  { %2453 = vmatprep.subr.bf16.mxu0 %v2452_v56 }
 0x2b4   :  { %2455 = vmatpush3.bf16.msra.mxu0 %v2454_v53 }
 0x2b5   :  { %2457 = vmatprep.subr.bf16.mxu0 %v2456_v60 }
 0x2b8   :  { %2459 = vmatpush3.bf16.msra.mxu0 %v2458_v2 }
 0x2b9   :  { %2461 = vmatprep.subr.bf16.mxu0 %v2460_v3 }
 0x2bc   :  { %2463 = vmatpush3.bf16.msra.mxu0 %v2462_v7 }
 0x2bd   :  { %2465 = vmatprep.subr.bf16.mxu0 %v2464_v8 }
 0x2c0   :  { %2467 = vmatpush3.bf16.msra.mxu0 %v2466_v12 }
 0x2c1   :  { %2469 = vmatprep.subr.bf16.mxu0 %v2468_v13 }
 0x2c4   :  { %2471 = vmatpush3.bf16.msra.mxu0 %v2470_v17 }
 0x2c5   :  { %2473 = vmatprep.subr.bf16.mxu0 %v2472_v18 }
 0x2c8   :  { %2475 = vmatpush3.bf16.msra.mxu0 %v2474_v21 }
 0x2c9   :  { %2477 = vmatprep.subr.bf16.mxu0 %v2476_v23 }
 0x2cc   :  { %2479 = vmatpush3.bf16.msra.mxu0 %v2478_v26 }
 0x329   :  { %v1682_v46 = vpop.permute.xlu0 %1681 }
 0x382   :  { %v1560_v29 = vpop.f32.mrb[2].mxu0 }
 0x383   :  { %v2486_v30 = vadd.f32 %v1560_v29, %v1416_v27  ;;  %v1562_v41 = vpop.f32.mrb[3].mxu0 }
 0x384   :  { %v2487_v31 = vadd.f32 %v1562_v41, %v1420_v28 }
 0x385   :  { %v1565_v35 = vmax.f32 %v2486_v30, 0.0 }
 0x386   :  { %v1566_v32 = vmax.f32 %v2487_v31, 0.0 }
 0x388   :  { %1670 = vmatprep.mubr.f32.mxu0 %v1566_v32 }
 0x389   :  { %1671 = vmatmul.mubr.f32.vlgmr.msra.gmra.mrb[4].mxu0 %v1565_v35 }
 0x45c   :  { %v1798_v61 = vpop.f32.mrb[4].mxu0 }
 0x45d   :  { %v1799_v37 = vpop.f32.mrb[5].mxu0 }
 0x45e   :  { %v1800_v39 = vadd.f32 %v1799_v37, %v1798_v61 }
 0x460   :  { %v1673_v40 = vadd.f32 %v1800_v39, %v1765_v54 }
 0x462   :  { %v1676_v42 = vmax.f32 %v1673_v40, 0.0 }
 0x464   :  { %1804 = vmatpush3.xpose.msra.mxu1 %v1676_v42 }
 0x467   :  { %1806 = vmatmul.mubr.f32.vlgmr.msra.gmra.mrb[4].mxu1 %v1677_v43 }
 0x53a   :  { %v1750_v47 = vpop.f32.mrb[4].mxu1 }
 0x53b   :  { %v1751_v50 = vadd.f32 %v1750_v47, %v1682_v46  ;;  %v1807_v51 = vpop.f32.mrb[5].mxu1 }
 0x53d   :  { %1755 = vst.msk [vmem:[%s2964_s9] sm:$0xff] %vm1754_vm1, %v1751_v50 }
 0x53e   :  { %1760 = vsyncpa [#allocation3], 1 }
 0x53f   :  { %1761 = vsyncpa [#allocation5], 1 }
 0x540   :  { %1762 = vsyncpa [#allocation8], 1 }
 0x541   :  { %1763 = vsyncpa [#allocation11], 1 }
 0x542   :  { %1764 = vsyncpa [#allocation14], 1 }

</bundles_post_ra>
